<compile_context>
chip_gen: v5e
topology: v5e:2x2
jax: 0.10.0
libtpu: 0.0.40
codegen_flags: <defaults>
</compile_context>

<pallas_src>
import jax
import jax.numpy as jnp
from jax.experimental import pallas as pl
from jax.experimental.pallas import tpu as pltpu

EMBD = 16
BN_EPS = 1e-5
EDGE_GROUP = 8   # edges handled per unrolled gather/scatter body iteration
NUM_BANKS = 4    # scatter accumulator banks (bank = edge_row % NUM_BANKS)


def _round_up(x, m):
    return (x + m - 1) // m * m


def atom_gcn_kernel(
    # scalar-prefetch (SMEM)
    src_ref, dst_ref,            # (E_pad,) int32 each
    # inputs (VMEM)
    x_ref,                       # (Nr, D)    node features; rows >= N are zero padding
    wnode_ref,                   # (D, 4D)    [Wk_x^T | Wq_x^T | Wv_x^T | Wskip^T]
    bnode_ref,                   # (1, 4D)    [bk+bq | 0 | bv | 0]   (biases folded in)
    e_ref,                       # (TE, D)    edge features for this tile
    wedge_ref,                   # (D, 2D)    [(Wk_e+Wq_e)^T | Wv_e^T]
    bias_ref,                    # (1, D)     conv bias
    gamma_ref,                   # (1, D)
    beta_ref,                    # (1, D)
    # output
    out_ref,                     # (N, D)
    # scratch (VMEM, persistent across grid steps)
    xk_s,                        # (Nr, D)    x @ Wk_x^T + (bk+bq)              (gathered by dst)
    xqv_s,                       # (Nr, 2D)   x @ [Wq_x^T|Wv_x^T] (+bv on v)    (gathered by src)
    xsk_s,                       # (Nr, D)    x @ Wskip^T
    aggr_s,                      # (B, Nr, D) banked message accumulator
    gd_s,                        # (TE, D)    gathered xk[dst]
    gs_s,                        # (TE, 2D)   gathered [xq|xv][src]
    msg_s,                       # (TE, D)    per-edge messages
):
    f32 = jnp.float32
    t = pl.program_id(0)
    n_tiles = pl.num_programs(0)
    te, d = e_ref.shape
    n_out = out_ref.shape[0]

    # ---- grid step 0: project all nodes once, fold biases, clear the banked accumulator
    @pl.when(t == 0)
    def _init():
        proj = jnp.dot(x_ref[...], wnode_ref[...], preferred_element_type=f32)  # (Nr, 4D)
        proj = proj + bnode_ref[...]            # bk+bq folded into k, bv into v (done once)
        xk_s[...] = proj[:, 0:d]
        xqv_s[...] = proj[:, d:3 * d]
        xsk_s[...] = proj[:, 3 * d:4 * d]
        aggr_s[...] = jnp.zeros_like(aggr_s)

    base = t * te

    # ---- gather projected node rows for this edge tile ---------------------------------
    # Unrolled by EDGE_GROUP so 8 independent index-load -> dynamic-load -> store chains
    # are in flight per scheduled window.
    def _gather_group(g, carry):
        row0 = pl.multiple_of(g * EDGE_GROUP, EDGE_GROUP)
        for u in range(EDGE_GROUP):
            row = row0 + u
            e_idx = base + row
            s_idx = src_ref[e_idx]
            d_idx = dst_ref[e_idx]
            gd_s[pl.ds(row, 1), :] = xk_s[pl.ds(d_idx, 1), :]
            gs_s[pl.ds(row, 1), :] = xqv_s[pl.ds(s_idx, 1), :]
        return carry

    jax.lax.fori_loop(0, te // EDGE_GROUP, _gather_group, 0)

    # ---- vectorized per-edge compute for the whole tile (biases already folded) --------
    ep = jnp.dot(e_ref[...], wedge_ref[...], preferred_element_type=f32)  # (TE, 2D)
    gs = gs_s[...]
    gate = gd_s[...] + gs[:, 0:d] + ep[:, 0:d]
    val = gs[:, d:2 * d] + ep[:, d:2 * d]
    msg_s[...] = jax.nn.sigmoid(gate) * val

    # ---- scatter-add messages onto destination rows -------------------------------------
    # Banked + unrolled: within a group of 8 edges, edge u accumulates into bank u % 4, so
    # the RMW chains that the compiler cannot prove non-aliasing are spread over 4 banks.
    def _scatter_group(g, carry):
        row0 = pl.multiple_of(g * EDGE_GROUP, EDGE_GROUP)
        for u in range(EDGE_GROUP):
            row = row0 + u
            b = u % NUM_BANKS
            d_idx = dst_ref[base + row]
            aggr_s[b, pl.ds(d_idx, 1), :] = (
                aggr_s[b, pl.ds(d_idx, 1), :] + msg_s[pl.ds(row, 1), :])
        return carry

    jax.lax.fori_loop(0, te // EDGE_GROUP, _scatter_group, 0)

    # ---- last grid step: skip + bias + BatchNorm(batch stats) + ReLU + residual ---------
    @pl.when(t == n_tiles - 1)
    def _finish():
        # Padded edges (src=dst=n_out, edge_attr=0) dump sigmoid(bk+bq)*bv into node row
        # n_out; slicing [0:n_out] drops them.  Keep this in sync with the wrapper padding.
        aggr = aggr_s[0, 0:n_out, :]
        for b in range(1, NUM_BANKS):
            aggr = aggr + aggr_s[b, 0:n_out, :]
        h = aggr + xsk_s[0:n_out, :] + bias_ref[...]
        mean = jnp.mean(h, axis=0, keepdims=True)
        cent = h - mean
        var = jnp.mean(cent * cent, axis=0, keepdims=True)   # biased (training-mode) var
        hn = cent * jax.lax.rsqrt(var + BN_EPS)
        hn = gamma_ref[...] * hn + beta_ref[...]
        out_ref[...] = x_ref[0:n_out, :] + jnp.maximum(hn, 0.0)


def atom_gcn_layer(x, edge_index, edge_attr, params, *, edge_tile=1024):
    """x: (N, D) f32, edge_index: (2, E) i32, edge_attr: (E, D) f32."""
    n, d = x.shape
    e_num = edge_attr.shape[0]

    # --- fuse weights on the host (O(D^2)) ---
    wnode = jnp.concatenate(
        [params["wk"][:, :d].T, params["wq"][:, :d].T,
         params["wv"][:, :d].T, params["wskip"].T], axis=1).astype(jnp.float32)   # (D, 4D)
    wedge = jnp.concatenate(
        [(params["wk"][:, d:] + params["wq"][:, d:]).T,
         params["wv"][:, d:].T], axis=1).astype(jnp.float32)                      # (D, 2D)

    row = lambda b: b.reshape(1, -1).astype(jnp.float32)
    zero_row = jnp.zeros((1, d), jnp.float32)
    # gate bias (bk+bq) folded into the k column, bv folded into the v column
    bnode = jnp.concatenate(
        [row(params["bk"] + params["bq"]), zero_row, row(params["bv"]), zero_row],
        axis=1)                                                                   # (1, 4D)
    bias = row(params["bias"])
    gamma = row(params["gamma"])
    beta = row(params["beta"])

    # --- padding: node table gets 8 extra zero rows; row `n` is the dump row for padded
    #     edges.  Edges are padded to a multiple of the edge tile with src=dst=n and
    #     edge_attr=0, so fake messages land in a row that is never read by the epilogue.
    te = _round_up(min(edge_tile, _round_up(e_num, EDGE_GROUP)), EDGE_GROUP)
    e_pad = _round_up(e_num, te)
    pad_e = e_pad - e_num
    nr = n + 8
    assert nr > n, "need at least one padded dump row for fake edges"
    assert te % EDGE_GROUP == 0

    x_pad = jnp.concatenate(
        [x.astype(jnp.float32), jnp.zeros((nr - n, d), jnp.float32)], axis=0)
    src = jnp.concatenate(
        [edge_index[0].astype(jnp.int32), jnp.full((pad_e,), n, jnp.int32)])
    dst = jnp.concatenate(
        [edge_index[1].astype(jnp.int32), jnp.full((pad_e,), n, jnp.int32)])
    ea = jnp.concatenate(
        [edge_attr.astype(jnp.float32), jnp.zeros((pad_e, d), jnp.float32)], axis=0)
    # TODO(synk): for very large E, chunk src/dst into per-tile SMEM blocks instead of
    #             scalar-prefetching the full arrays (SMEM pads 1-D arrays to next pow2).

    grid = (e_pad // te,)

    def const_map(shape):
        return pl.BlockSpec(shape, lambda i, s_ref, d_ref: (0,) * len(shape))

    grid_spec = pltpu.PrefetchScalarGridSpec(
        num_scalar_prefetch=2,
        grid=grid,
        in_specs=[
            const_map((nr, d)),                                       # x_pad (resident)
            const_map((d, 4 * d)),                                    # wnode
            const_map((1, 4 * d)),                                    # bnode
            pl.BlockSpec((te, d), lambda i, s_ref, d_ref: (i, 0)),    # edge_attr tile
            const_map((d, 2 * d)),                                    # wedge
            const_map((1, d)),                                        # conv bias
            const_map((1, d)),                                        # gamma
            const_map((1, d)),                                        # beta
        ],
        out_specs=pl.BlockSpec((n, d), lambda i, s_ref, d_ref: (0, 0)),
        scratch_shapes=[
            pltpu.VMEM((nr, d), jnp.float32),               # xk (+ gate bias)
            pltpu.VMEM((nr, 2 * d), jnp.float32),           # [xq | xv(+bv)]
            pltpu.VMEM((nr, d), jnp.float32),               # xskip
            pltpu.VMEM((NUM_BANKS, nr, d), jnp.float32),    # banked aggr accumulator
            pltpu.VMEM((te, d), jnp.float32),               # gathered xk[dst]
            pltpu.VMEM((te, 2 * d), jnp.float32),           # gathered [xq|xv][src]
            pltpu.VMEM((te, d), jnp.float32),               # messages
        ],
    )

    # lane-padded VMEM footprint estimate -> vmem limit with headroom
    def _padded_bytes(r, c):
        return _round_up(max(r, 1), 8) * _round_up(max(c, 1), 128) * 4

    vmem_need = (
        2 * (_padded_bytes(nr, d) + _padded_bytes(d, 4 * d) + _padded_bytes(1, 4 * d)
             + _padded_bytes(te, d) + _padded_bytes(d, 2 * d) + 3 * _padded_bytes(1, d)
             + _padded_bytes(n, d))                                    # double-buffered I/O
        + 2 * _padded_bytes(nr, d) + _padded_bytes(nr, 2 * d)
        + NUM_BANKS * _padded_bytes(nr, d)
        + 2 * _padded_bytes(te, d) + _padded_bytes(te, 2 * d))         # scratch
    vmem_limit = int(min(64 * 1024 * 1024, max(32 * 1024 * 1024, 2 * vmem_need)))

    flops = int(2 * nr * d * 4 * d            # node projection (once)
                + 2 * e_pad * d * 2 * d       # edge projection
                + 10 * e_pad * d)             # gate/value/message elementwise
    bytes_accessed = int(4 * (x_pad.size + ea.size + wnode.size + wedge.size
                              + bnode.size + 3 * d + n * d) + 8 * e_pad)

    return pl.pallas_call(
        atom_gcn_kernel,
        out_shape=jax.ShapeDtypeStruct((n, d), jnp.float32),
        grid_spec=grid_spec,
        compiler_params=pltpu.CompilerParams(
            dimension_semantics=("arbitrary",),   # edge axis carries the accumulator
            vmem_limit_bytes=vmem_limit,
        ),
        cost_estimate=pl.CostEstimate(
            flops=flops, transcendentals=int(e_pad * d), bytes_accessed=bytes_accessed),
    )(src, dst, x_pad, wnode, bnode, ea, wedge, bias, gamma, beta)


def reference(x, edge_index, edge_attr, params):
    src, dst = edge_index[0], edge_index[1]
    cat_k = jnp.concatenate([x[dst], edge_attr], axis=-1)
    cat_q = jnp.concatenate([x[src], edge_attr], axis=-1)
    cat_v = jnp.concatenate([x[src], edge_attr], axis=-1)
    k = cat_k @ params["wk"].T + params["bk"]
    q = cat_q @ params["wq"].T + params["bq"]
    v = cat_v @ params["wv"].T + params["bv"]
    msg = jax.nn.sigmoid(k + q) * v
    aggr = jnp.zeros_like(x).at[dst].add(msg)
    h = aggr + x @ params["wskip"].T + params["bias"]
    mean = h.mean(0, keepdims=True)
    var = ((h - mean) ** 2).mean(0, keepdims=True)
    h = (h - mean) / jnp.sqrt(var + BN_EPS)
    h = params["gamma"] * h + params["beta"]
    return x + jnp.maximum(h, 0.0)


if __name__ == "__main__":
    key = jax.random.PRNGKey(0)
    n_nodes, n_edges, d = 16, 32, EMBD

    ks = jax.random.split(key, 12)
    x = jax.random.normal(ks[0], (n_nodes, d), jnp.float32)
    edge_attr = jax.random.normal(ks[1], (n_edges, d), jnp.float32)
    edge_index = jax.random.randint(ks[2], (2, n_edges), 0, n_nodes, jnp.int32)

    scale = 0.1
    params = {
        # PyTorch Linear weight layout: (out_features, in_features)
        "wk": scale * jax.random.normal(ks[3], (d, 2 * d), jnp.float32),
        "bk": scale * jax.random.normal(ks[4], (d,), jnp.float32),
        "wq": scale * jax.random.normal(ks[5], (d, 2 * d), jnp.float32),
        "bq": scale * jax.random.normal(ks[6], (d,), jnp.float32),
        "wv": scale * jax.random.normal(ks[7], (d, 2 * d), jnp.float32),
        "bv": scale * jax.random.normal(ks[8], (d,), jnp.float32),
        "wskip": scale * jax.random.normal(ks[9], (d, d), jnp.float32),  # bias=False in PyG
        "bias": scale * jax.random.normal(ks[10], (d,), jnp.float32),
        "gamma": jnp.ones((d,), jnp.float32),   # BatchNorm1d default init
        "beta": jnp.zeros((d,), jnp.float32),
    }

    out = atom_gcn_layer(x, edge_index, edge_attr, params)
    out = jax.block_until_ready(out)

    ref = reference(x, edge_index, edge_attr, params)
    assert out.shape == (n_nodes, d)
    assert jnp.allclose(out, ref, atol=1e-4, rtol=1e-4), "mismatch vs JAX reference"

    print("KERNEL_OK")
</pallas_src>

<mosaic_0001>
module attributes {stable_mosaic.version = 11 : i64} {
  func.func @atom_gcn_kernel(%arg0: i32, %arg1: memref<32xi32, #tpu.memory_space<smem>>, %arg2: memref<32xi32, #tpu.memory_space<smem>>, %arg3: memref<24x16xf32, #tpu.memory_space<vmem>>, %arg4: memref<16x64xf32, #tpu.memory_space<vmem>>, %arg5: memref<1x64xf32, #tpu.memory_space<vmem>>, %arg6: memref<32x16xf32, #tpu.memory_space<vmem>>, %arg7: memref<16x32xf32, #tpu.memory_space<vmem>>, %arg8: memref<1x16xf32, #tpu.memory_space<vmem>>, %arg9: memref<1x16xf32, #tpu.memory_space<vmem>>, %arg10: memref<1x16xf32, #tpu.memory_space<vmem>>, %arg11: memref<16x16xf32, #tpu.memory_space<vmem>>, %arg12: memref<24x16xf32, #tpu.memory_space<vmem>>, %arg13: memref<24x32xf32, #tpu.memory_space<vmem>>, %arg14: memref<24x16xf32, #tpu.memory_space<vmem>>, %arg15: memref<4x24x16xf32, #tpu.memory_space<vmem>>, %arg16: memref<32x16xf32, #tpu.memory_space<vmem>>, %arg17: memref<32x32xf32, #tpu.memory_space<vmem>>, %arg18: memref<32x16xf32, #tpu.memory_space<vmem>>) attributes {dimension_semantics = [#tpu.dimension_semantics<arbitrary>], iteration_bounds = array<i64: 1>, scalar_prefetch = 2 : i64, scratch_operands = 7 : i64, tpu.core_type = #tpu.core_type<tc>, window_params = [{pipeline_mode = #tpu.pipeline_mode<synchronous>, transform_indices = @transform_0, window_bounds = array<i64: 24, 16>}, {pipeline_mode = #tpu.pipeline_mode<synchronous>, transform_indices = @transform_1, window_bounds = array<i64: 16, 64>}, {pipeline_mode = #tpu.pipeline_mode<synchronous>, transform_indices = @transform_2, window_bounds = array<i64: 1, 64>}, {transform_indices = @transform_3, window_bounds = array<i64: 32, 16>}, {pipeline_mode = #tpu.pipeline_mode<synchronous>, transform_indices = @transform_4, window_bounds = array<i64: 16, 32>}, {pipeline_mode = #tpu.pipeline_mode<synchronous>, transform_indices = @transform_5, window_bounds = array<i64: 1, 16>}, {pipeline_mode = #tpu.pipeline_mode<synchronous>, transform_indices = @transform_6, window_bounds = array<i64: 1, 16>}, {pipeline_mode = #tpu.pipeline_mode<synchronous>, transform_indices = @transform_7, window_bounds = array<i64: 1, 16>}, {pipeline_mode = #tpu.pipeline_mode<synchronous>, transform_indices = @transform_8, window_bounds = array<i64: 16, 16>}]} {
    %c0_i32 = arith.constant 0 : i32
    %0 = arith.cmpi eq, %arg0, %c0_i32 : i32
    %1 = arith.extui %0 : i1 to i32
    %c0_i32_0 = arith.constant 0 : i32
    %2 = arith.cmpi ne, %1, %c0_i32_0 : i32
    scf.if %2 {
      %c0_19 = arith.constant 0 : index
      %c0_20 = arith.constant 0 : index
      %28 = vector.load %arg3[%c0_19, %c0_20] : memref<24x16xf32, #tpu.memory_space<vmem>>, vector<24x16xf32>
      %c0_21 = arith.constant 0 : index
      %c0_22 = arith.constant 0 : index
      %29 = vector.load %arg4[%c0_21, %c0_22] : memref<16x64xf32, #tpu.memory_space<vmem>>, vector<16x64xf32>
      %cst_23 = arith.constant dense<0.000000e+00> : vector<24x64xf32>
      %30 = tpu.matmul %28, %29, %cst_23 {dimension_numbers = #tpu.dot_dimension_numbers<[1], [0], [0], [1], [0, 0, 1, 1], [], []>} : vector<24x16xf32>, vector<16x64xf32>, vector<24x64xf32> -> vector<24x64xf32>
      %c0_24 = arith.constant 0 : index
      %c0_25 = arith.constant 0 : index
      %31 = vector.load %arg5[%c0_24, %c0_25] : memref<1x64xf32, #tpu.memory_space<vmem>>, vector<1x64xf32>
      %32 = vector.broadcast %31 : vector<1x64xf32> to vector<24x64xf32>
      %33 = arith.addf %30, %32 : vector<24x64xf32>
      %34 = vector.extract_strided_slice %33 {offsets = [0, 0], sizes = [24, 16], strides = [1, 1]} : vector<24x64xf32> to vector<24x16xf32>
      %c0_26 = arith.constant 0 : index
      %c0_27 = arith.constant 0 : index
      %35 = vector.load %arg12[%c0_26, %c0_27] : memref<24x16xf32, #tpu.memory_space<vmem>>, vector<24x16xf32>
      tpu.vector_store %arg12[%c0_26, %c0_27], %34 {strides = array<i32>} : memref<24x16xf32, #tpu.memory_space<vmem>>, vector<24x16xf32>,
      %36 = vector.extract_strided_slice %33 {offsets = [0, 16], sizes = [24, 32], strides = [1, 1]} : vector<24x64xf32> to vector<24x32xf32>
      %c0_28 = arith.constant 0 : index
      %c0_29 = arith.constant 0 : index
      %37 = vector.load %arg13[%c0_28, %c0_29] : memref<24x32xf32, #tpu.memory_space<vmem>>, vector<24x32xf32>
      tpu.vector_store %arg13[%c0_28, %c0_29], %36 {strides = array<i32>} : memref<24x32xf32, #tpu.memory_space<vmem>>, vector<24x32xf32>,
      %38 = vector.extract_strided_slice %33 {offsets = [0, 48], sizes = [24, 16], strides = [1, 1]} : vector<24x64xf32> to vector<24x16xf32>
      %c0_30 = arith.constant 0 : index
      %c0_31 = arith.constant 0 : index
      %39 = vector.load %arg14[%c0_30, %c0_31] : memref<24x16xf32, #tpu.memory_space<vmem>>, vector<24x16xf32>
      tpu.vector_store %arg14[%c0_30, %c0_31], %38 {strides = array<i32>} : memref<24x16xf32, #tpu.memory_space<vmem>>, vector<24x16xf32>,
      %cst_32 = arith.constant 0.000000e+00 : f32
      %40 = vector.broadcast %cst_32 : f32 to vector<4x24x16xf32>
      %c0_33 = arith.constant 0 : index
      %c0_34 = arith.constant 0 : index
      %c0_35 = arith.constant 0 : index
      %41 = vector.load %arg15[%c0_33, %c0_34, %c0_35] : memref<4x24x16xf32, #tpu.memory_space<vmem>>, vector<4x24x16xf32>
      tpu.vector_store %arg15[%c0_33, %c0_34, %c0_35], %40 {strides = array<i32>} : memref<4x24x16xf32, #tpu.memory_space<vmem>>, vector<4x24x16xf32>,
    } else {
    }
    %c32_i32 = arith.constant 32 : i32
    %3 = arith.muli %arg0, %c32_i32 : i32
    %c0_i32_1 = arith.constant 0 : i32
    %c4_i32 = arith.constant 4 : i32
    %4 = arith.addi %c0_i32_1, %c4_i32 : i32
    %c1_i32 = arith.constant 1 : i32
    scf.for %arg19 = %c0_i32_1 to %4 step %c1_i32  : i32 {
      %c8_i32 = arith.constant 8 : i32
      %28 = arith.muli %arg19, %c8_i32 : i32
      %29 = tpu.assume_multiple %28, 8 : i32
      %c0_i32_19 = arith.constant 0 : i32
      %30 = arith.addi %29, %c0_i32_19 : i32
      %31 = arith.addi %3, %30 : i32
      %32 = arith.index_cast %31 : i32 to index
      %33 = memref.load %arg1[%32] : memref<32xi32, #tpu.memory_space<smem>>
      %34 = arith.index_cast %31 : i32 to index
      %35 = memref.load %arg2[%34] : memref<32xi32, #tpu.memory_space<smem>>
      %36 = arith.index_cast %35 : i32 to index
      %c0_20 = arith.constant 0 : index
      %37 = vector.load %arg12[%36, %c0_20] : memref<24x16xf32, #tpu.memory_space<vmem>>, vector<1x16xf32>
      %38 = arith.index_cast %30 : i32 to index
      %c0_21 = arith.constant 0 : index
      %39 = vector.load %arg16[%38, %c0_21] : memref<32x16xf32, #tpu.memory_space<vmem>>, vector<1x16xf32>
      tpu.vector_store %arg16[%38, %c0_21], %37 {strides = array<i32>} : memref<32x16xf32, #tpu.memory_space<vmem>>, vector<1x16xf32>,
      %40 = arith.index_cast %33 : i32 to index
      %c0_22 = arith.constant 0 : index
      %41 = vector.load %arg13[%40, %c0_22] : memref<24x32xf32, #tpu.memory_space<vmem>>, vector<1x32xf32>
      %42 = arith.index_cast %30 : i32 to index
      %c0_23 = arith.constant 0 : index
      %43 = vector.load %arg17[%42, %c0_23] : memref<32x32xf32, #tpu.memory_space<vmem>>, vector<1x32xf32>
      tpu.vector_store %arg17[%42, %c0_23], %41 {strides = array<i32>} : memref<32x32xf32, #tpu.memory_space<vmem>>, vector<1x32xf32>,
      %c1_i32_24 = arith.constant 1 : i32
      %44 = arith.addi %29, %c1_i32_24 : i32
      %45 = arith.addi %3, %44 : i32
      %46 = arith.index_cast %45 : i32 to index
      %47 = memref.load %arg1[%46] : memref<32xi32, #tpu.memory_space<smem>>
      %48 = arith.index_cast %45 : i32 to index
      %49 = memref.load %arg2[%48] : memref<32xi32, #tpu.memory_space<smem>>
      %50 = arith.index_cast %49 : i32 to index
      %c0_25 = arith.constant 0 : index
      %51 = vector.load %arg12[%50, %c0_25] : memref<24x16xf32, #tpu.memory_space<vmem>>, vector<1x16xf32>
      %52 = arith.index_cast %44 : i32 to index
      %c0_26 = arith.constant 0 : index
      %53 = vector.load %arg16[%52, %c0_26] : memref<32x16xf32, #tpu.memory_space<vmem>>, vector<1x16xf32>
      tpu.vector_store %arg16[%52, %c0_26], %51 {strides = array<i32>} : memref<32x16xf32, #tpu.memory_space<vmem>>, vector<1x16xf32>,
      %54 = arith.index_cast %47 : i32 to index
      %c0_27 = arith.constant 0 : index
      %55 = vector.load %arg13[%54, %c0_27] : memref<24x32xf32, #tpu.memory_space<vmem>>, vector<1x32xf32>
      %56 = arith.index_cast %44 : i32 to index
      %c0_28 = arith.constant 0 : index
      %57 = vector.load %arg17[%56, %c0_28] : memref<32x32xf32, #tpu.memory_space<vmem>>, vector<1x32xf32>
      tpu.vector_store %arg17[%56, %c0_28], %55 {strides = array<i32>} : memref<32x32xf32, #tpu.memory_space<vmem>>, vector<1x32xf32>,
      %c2_i32 = arith.constant 2 : i32
      %58 = arith.addi %29, %c2_i32 : i32
      %59 = arith.addi %3, %58 : i32
      %60 = arith.index_cast %59 : i32 to index
      %61 = memref.load %arg1[%60] : memref<32xi32, #tpu.memory_space<smem>>
      %62 = arith.index_cast %59 : i32 to index
      %63 = memref.load %arg2[%62] : memref<32xi32, #tpu.memory_space<smem>>
      %64 = arith.index_cast %63 : i32 to index
      %c0_29 = arith.constant 0 : index
      %65 = vector.load %arg12[%64, %c0_29] : memref<24x16xf32, #tpu.memory_space<vmem>>, vector<1x16xf32>
      %66 = arith.index_cast %58 : i32 to index
      %c0_30 = arith.constant 0 : index
      %67 = vector.load %arg16[%66, %c0_30] : memref<32x16xf32, #tpu.memory_space<vmem>>, vector<1x16xf32>
      tpu.vector_store %arg16[%66, %c0_30], %65 {strides = array<i32>} : memref<32x16xf32, #tpu.memory_space<vmem>>, vector<1x16xf32>,
      %68 = arith.index_cast %61 : i32 to index
      %c0_31 = arith.constant 0 : index
      %69 = vector.load %arg13[%68, %c0_31] : memref<24x32xf32, #tpu.memory_space<vmem>>, vector<1x32xf32>
      %70 = arith.index_cast %58 : i32 to index
      %c0_32 = arith.constant 0 : index
      %71 = vector.load %arg17[%70, %c0_32] : memref<32x32xf32, #tpu.memory_space<vmem>>, vector<1x32xf32>
      tpu.vector_store %arg17[%70, %c0_32], %69 {strides = array<i32>} : memref<32x32xf32, #tpu.memory_space<vmem>>, vector<1x32xf32>,
      %c3_i32 = arith.constant 3 : i32
      %72 = arith.addi %29, %c3_i32 : i32
      %73 = arith.addi %3, %72 : i32
      %74 = arith.index_cast %73 : i32 to index
      %75 = memref.load %arg1[%74] : memref<32xi32, #tpu.memory_space<smem>>
      %76 = arith.index_cast %73 : i32 to index
      %77 = memref.load %arg2[%76] : memref<32xi32, #tpu.memory_space<smem>>
      %78 = arith.index_cast %77 : i32 to index
      %c0_33 = arith.constant 0 : index
      %79 = vector.load %arg12[%78, %c0_33] : memref<24x16xf32, #tpu.memory_space<vmem>>, vector<1x16xf32>
      %80 = arith.index_cast %72 : i32 to index
      %c0_34 = arith.constant 0 : index
      %81 = vector.load %arg16[%80, %c0_34] : memref<32x16xf32, #tpu.memory_space<vmem>>, vector<1x16xf32>
      tpu.vector_store %arg16[%80, %c0_34], %79 {strides = array<i32>} : memref<32x16xf32, #tpu.memory_space<vmem>>, vector<1x16xf32>,
      %82 = arith.index_cast %75 : i32 to index
      %c0_35 = arith.constant 0 : index
      %83 = vector.load %arg13[%82, %c0_35] : memref<24x32xf32, #tpu.memory_space<vmem>>, vector<1x32xf32>
      %84 = arith.index_cast %72 : i32 to index
      %c0_36 = arith.constant 0 : index
      %85 = vector.load %arg17[%84, %c0_36] : memref<32x32xf32, #tpu.memory_space<vmem>>, vector<1x32xf32>
      tpu.vector_store %arg17[%84, %c0_36], %83 {strides = array<i32>} : memref<32x32xf32, #tpu.memory_space<vmem>>, vector<1x32xf32>,
      %c4_i32_37 = arith.constant 4 : i32
      %86 = arith.addi %29, %c4_i32_37 : i32
      %87 = arith.addi %3, %86 : i32
      %88 = arith.index_cast %87 : i32 to index
      %89 = memref.load %arg1[%88] : memref<32xi32, #tpu.memory_space<smem>>
      %90 = arith.index_cast %87 : i32 to index
      %91 = memref.load %arg2[%90] : memref<32xi32, #tpu.memory_space<smem>>
      %92 = arith.index_cast %91 : i32 to index
      %c0_38 = arith.constant 0 : index
      %93 = vector.load %arg12[%92, %c0_38] : memref<24x16xf32, #tpu.memory_space<vmem>>, vector<1x16xf32>
      %94 = arith.index_cast %86 : i32 to index
      %c0_39 = arith.constant 0 : index
      %95 = vector.load %arg16[%94, %c0_39] : memref<32x16xf32, #tpu.memory_space<vmem>>, vector<1x16xf32>
      tpu.vector_store %arg16[%94, %c0_39], %93 {strides = array<i32>} : memref<32x16xf32, #tpu.memory_space<vmem>>, vector<1x16xf32>,
      %96 = arith.index_cast %89 : i32 to index
      %c0_40 = arith.constant 0 : index
      %97 = vector.load %arg13[%96, %c0_40] : memref<24x32xf32, #tpu.memory_space<vmem>>, vector<1x32xf32>
      %98 = arith.index_cast %86 : i32 to index
      %c0_41 = arith.constant 0 : index
      %99 = vector.load %arg17[%98, %c0_41] : memref<32x32xf32, #tpu.memory_space<vmem>>, vector<1x32xf32>
      tpu.vector_store %arg17[%98, %c0_41], %97 {strides = array<i32>} : memref<32x32xf32, #tpu.memory_space<vmem>>, vector<1x32xf32>,
      %c5_i32 = arith.constant 5 : i32
      %100 = arith.addi %29, %c5_i32 : i32
      %101 = arith.addi %3, %100 : i32
      %102 = arith.index_cast %101 : i32 to index
      %103 = memref.load %arg1[%102] : memref<32xi32, #tpu.memory_space<smem>>
      %104 = arith.index_cast %101 : i32 to index
      %105 = memref.load %arg2[%104] : memref<32xi32, #tpu.memory_space<smem>>
      %106 = arith.index_cast %105 : i32 to index
      %c0_42 = arith.constant 0 : index
      %107 = vector.load %arg12[%106, %c0_42] : memref<24x16xf32, #tpu.memory_space<vmem>>, vector<1x16xf32>
      %108 = arith.index_cast %100 : i32 to index
      %c0_43 = arith.constant 0 : index
      %109 = vector.load %arg16[%108, %c0_43] : memref<32x16xf32, #tpu.memory_space<vmem>>, vector<1x16xf32>
      tpu.vector_store %arg16[%108, %c0_43], %107 {strides = array<i32>} : memref<32x16xf32, #tpu.memory_space<vmem>>, vector<1x16xf32>,
      %110 = arith.index_cast %103 : i32 to index
      %c0_44 = arith.constant 0 : index
      %111 = vector.load %arg13[%110, %c0_44] : memref<24x32xf32, #tpu.memory_space<vmem>>, vector<1x32xf32>
      %112 = arith.index_cast %100 : i32 to index
      %c0_45 = arith.constant 0 : index
      %113 = vector.load %arg17[%112, %c0_45] : memref<32x32xf32, #tpu.memory_space<vmem>>, vector<1x32xf32>
      tpu.vector_store %arg17[%112, %c0_45], %111 {strides = array<i32>} : memref<32x32xf32, #tpu.memory_space<vmem>>, vector<1x32xf32>,
      %c6_i32 = arith.constant 6 : i32
      %114 = arith.addi %29, %c6_i32 : i32
      %115 = arith.addi %3, %114 : i32
      %116 = arith.index_cast %115 : i32 to index
      %117 = memref.load %arg1[%116] : memref<32xi32, #tpu.memory_space<smem>>
      %118 = arith.index_cast %115 : i32 to index
      %119 = memref.load %arg2[%118] : memref<32xi32, #tpu.memory_space<smem>>
      %120 = arith.index_cast %119 : i32 to index
      %c0_46 = arith.constant 0 : index
      %121 = vector.load %arg12[%120, %c0_46] : memref<24x16xf32, #tpu.memory_space<vmem>>, vector<1x16xf32>
      %122 = arith.index_cast %114 : i32 to index
      %c0_47 = arith.constant 0 : index
      %123 = vector.load %arg16[%122, %c0_47] : memref<32x16xf32, #tpu.memory_space<vmem>>, vector<1x16xf32>
      tpu.vector_store %arg16[%122, %c0_47], %121 {strides = array<i32>} : memref<32x16xf32, #tpu.memory_space<vmem>>, vector<1x16xf32>,
      %124 = arith.index_cast %117 : i32 to index
      %c0_48 = arith.constant 0 : index
      %125 = vector.load %arg13[%124, %c0_48] : memref<24x32xf32, #tpu.memory_space<vmem>>, vector<1x32xf32>
      %126 = arith.index_cast %114 : i32 to index
      %c0_49 = arith.constant 0 : index
      %127 = vector.load %arg17[%126, %c0_49] : memref<32x32xf32, #tpu.memory_space<vmem>>, vector<1x32xf32>
      tpu.vector_store %arg17[%126, %c0_49], %125 {strides = array<i32>} : memref<32x32xf32, #tpu.memory_space<vmem>>, vector<1x32xf32>,
      %c7_i32 = arith.constant 7 : i32
      %128 = arith.addi %29, %c7_i32 : i32
      %129 = arith.addi %3, %128 : i32
      %130 = arith.index_cast %129 : i32 to index
      %131 = memref.load %arg1[%130] : memref<32xi32, #tpu.memory_space<smem>>
      %132 = arith.index_cast %129 : i32 to index
      %133 = memref.load %arg2[%132] : memref<32xi32, #tpu.memory_space<smem>>
      %134 = arith.index_cast %133 : i32 to index
      %c0_50 = arith.constant 0 : index
      %135 = vector.load %arg12[%134, %c0_50] : memref<24x16xf32, #tpu.memory_space<vmem>>, vector<1x16xf32>
      %136 = arith.index_cast %128 : i32 to index
      %c0_51 = arith.constant 0 : index
      %137 = vector.load %arg16[%136, %c0_51] : memref<32x16xf32, #tpu.memory_space<vmem>>, vector<1x16xf32>
      tpu.vector_store %arg16[%136, %c0_51], %135 {strides = array<i32>} : memref<32x16xf32, #tpu.memory_space<vmem>>, vector<1x16xf32>,
      %138 = arith.index_cast %131 : i32 to index
      %c0_52 = arith.constant 0 : index
      %139 = vector.load %arg13[%138, %c0_52] : memref<24x32xf32, #tpu.memory_space<vmem>>, vector<1x32xf32>
      %140 = arith.index_cast %128 : i32 to index
      %c0_53 = arith.constant 0 : index
      %141 = vector.load %arg17[%140, %c0_53] : memref<32x32xf32, #tpu.memory_space<vmem>>, vector<1x32xf32>
      tpu.vector_store %arg17[%140, %c0_53], %139 {strides = array<i32>} : memref<32x32xf32, #tpu.memory_space<vmem>>, vector<1x32xf32>,
    }
    %c4_i32_2 = arith.constant 4 : i32
    %c0 = arith.constant 0 : index
    %c0_3 = arith.constant 0 : index
    %5 = vector.load %arg6[%c0, %c0_3] : memref<32x16xf32, #tpu.memory_space<vmem>>, vector<32x16xf32>
    %c0_4 = arith.constant 0 : index
    %c0_5 = arith.constant 0 : index
    %6 = vector.load %arg7[%c0_4, %c0_5] : memref<16x32xf32, #tpu.memory_space<vmem>>, vector<16x32xf32>
    %cst = arith.constant dense<0.000000e+00> : vector<32x32xf32>
    %7 = tpu.matmul %5, %6, %cst {dimension_numbers = #tpu.dot_dimension_numbers<[1], [0], [0], [1], [0, 0, 1, 1], [], []>} : vector<32x16xf32>, vector<16x32xf32>, vector<32x32xf32> -> vector<32x32xf32>
    %c0_6 = arith.constant 0 : index
    %c0_7 = arith.constant 0 : index
    %8 = vector.load %arg17[%c0_6, %c0_7] : memref<32x32xf32, #tpu.memory_space<vmem>>, vector<32x32xf32>
    %c0_8 = arith.constant 0 : index
    %c0_9 = arith.constant 0 : index
    %9 = vector.load %arg16[%c0_8, %c0_9] : memref<32x16xf32, #tpu.memory_space<vmem>>, vector<32x16xf32>
    %10 = vector.extract_strided_slice %8 {offsets = [0, 0], sizes = [32, 16], strides = [1, 1]} : vector<32x32xf32> to vector<32x16xf32>
    %11 = arith.addf %9, %10 : vector<32x16xf32>
    %12 = vector.extract_strided_slice %7 {offsets = [0, 0], sizes = [32, 16], strides = [1, 1]} : vector<32x32xf32> to vector<32x16xf32>
    %13 = arith.addf %11, %12 : vector<32x16xf32>
    %14 = vector.extract_strided_slice %8 {offsets = [0, 16], sizes = [32, 16], strides = [1, 1]} : vector<32x32xf32> to vector<32x16xf32>
    %15 = vector.extract_strided_slice %7 {offsets = [0, 16], sizes = [32, 16], strides = [1, 1]} : vector<32x32xf32> to vector<32x16xf32>
    %16 = arith.addf %14, %15 : vector<32x16xf32>
    %17 = arith.negf %13 : vector<32x16xf32>
    %18 = math.exp %17 : vector<32x16xf32>
    %cst_10 = arith.constant 1.000000e+00 : f32
    %19 = vector.broadcast %cst_10 : f32 to vector<32x16xf32>
    %20 = arith.addf %19, %18 : vector<32x16xf32>
    %21 = arith.divf %19, %20 : vector<32x16xf32>
    %22 = arith.mulf %21, %16 : vector<32x16xf32>
    %c0_11 = arith.constant 0 : index
    %c0_12 = arith.constant 0 : index
    %23 = vector.load %arg18[%c0_11, %c0_12] : memref<32x16xf32, #tpu.memory_space<vmem>>, vector<32x16xf32>
    tpu.vector_store %arg18[%c0_11, %c0_12], %22 {strides = array<i32>} : memref<32x16xf32, #tpu.memory_space<vmem>>, vector<32x16xf32>,
    %c0_i32_13 = arith.constant 0 : i32
    %c4_i32_14 = arith.constant 4 : i32
    %24 = arith.addi %c0_i32_13, %c4_i32_14 : i32
    %c1_i32_15 = arith.constant 1 : i32
    scf.for %arg19 = %c0_i32_13 to %24 step %c1_i32_15  : i32 {
      %c8_i32 = arith.constant 8 : i32
      %28 = arith.muli %arg19, %c8_i32 : i32
      %29 = tpu.assume_multiple %28, 8 : i32
      %c0_i32_19 = arith.constant 0 : i32
      %30 = arith.addi %29, %c0_i32_19 : i32
      %31 = arith.addi %3, %30 : i32
      %32 = arith.index_cast %31 : i32 to index
      %33 = memref.load %arg2[%32] : memref<32xi32, #tpu.memory_space<smem>>
      %c0_20 = arith.constant 0 : index
      %34 = arith.index_cast %33 : i32 to index
      %c0_21 = arith.constant 0 : index
      %35 = vector.load %arg15[%c0_20, %34, %c0_21] : memref<4x24x16xf32, #tpu.memory_space<vmem>>, vector<1x1x16xf32>
      %36 = vector.shape_cast %35 : vector<1x1x16xf32> to vector<1x16xf32>
      %37 = arith.index_cast %30 : i32 to index
      %c0_22 = arith.constant 0 : index
      %38 = vector.load %arg18[%37, %c0_22] : memref<32x16xf32, #tpu.memory_space<vmem>>, vector<1x16xf32>
      %39 = arith.addf %36, %38 : vector<1x16xf32>
      %c0_23 = arith.constant 0 : index
      %40 = arith.index_cast %33 : i32 to index
      %c0_24 = arith.constant 0 : index
      %41 = vector.load %arg15[%c0_23, %40, %c0_24] : memref<4x24x16xf32, #tpu.memory_space<vmem>>, vector<1x1x16xf32>
      %42 = vector.shape_cast %41 : vector<1x1x16xf32> to vector<1x16xf32>
      %43 = vector.shape_cast %39 : vector<1x16xf32> to vector<1x1x16xf32>
      tpu.vector_store %arg15[%c0_23, %40, %c0_24], %43 {strides = array<i32>} : memref<4x24x16xf32, #tpu.memory_space<vmem>>, vector<1x1x16xf32>,
      %c1_i32_25 = arith.constant 1 : i32
      %44 = arith.addi %29, %c1_i32_25 : i32
      %45 = arith.addi %3, %44 : i32
      %46 = arith.index_cast %45 : i32 to index
      %47 = memref.load %arg2[%46] : memref<32xi32, #tpu.memory_space<smem>>
      %c1 = arith.constant 1 : index
      %48 = arith.index_cast %47 : i32 to index
      %c0_26 = arith.constant 0 : index
      %49 = vector.load %arg15[%c1, %48, %c0_26] : memref<4x24x16xf32, #tpu.memory_space<vmem>>, vector<1x1x16xf32>
      %50 = vector.shape_cast %49 : vector<1x1x16xf32> to vector<1x16xf32>
      %51 = arith.index_cast %44 : i32 to index
      %c0_27 = arith.constant 0 : index
      %52 = vector.load %arg18[%51, %c0_27] : memref<32x16xf32, #tpu.memory_space<vmem>>, vector<1x16xf32>
      %53 = arith.addf %50, %52 : vector<1x16xf32>
      %c1_28 = arith.constant 1 : index
      %54 = arith.index_cast %47 : i32 to index
      %c0_29 = arith.constant 0 : index
      %55 = vector.load %arg15[%c1_28, %54, %c0_29] : memref<4x24x16xf32, #tpu.memory_space<vmem>>, vector<1x1x16xf32>
      %56 = vector.shape_cast %55 : vector<1x1x16xf32> to vector<1x16xf32>
      %57 = vector.shape_cast %53 : vector<1x16xf32> to vector<1x1x16xf32>
      tpu.vector_store %arg15[%c1_28, %54, %c0_29], %57 {strides = array<i32>} : memref<4x24x16xf32, #tpu.memory_space<vmem>>, vector<1x1x16xf32>,
      %c2_i32 = arith.constant 2 : i32
      %58 = arith.addi %29, %c2_i32 : i32
      %59 = arith.addi %3, %58 : i32
      %60 = arith.index_cast %59 : i32 to index
      %61 = memref.load %arg2[%60] : memref<32xi32, #tpu.memory_space<smem>>
      %c2 = arith.constant 2 : index
      %62 = arith.index_cast %61 : i32 to index
      %c0_30 = arith.constant 0 : index
      %63 = vector.load %arg15[%c2, %62, %c0_30] : memref<4x24x16xf32, #tpu.memory_space<vmem>>, vector<1x1x16xf32>
      %64 = vector.shape_cast %63 : vector<1x1x16xf32> to vector<1x16xf32>
      %65 = arith.index_cast %58 : i32 to index
      %c0_31 = arith.constant 0 : index
      %66 = vector.load %arg18[%65, %c0_31] : memref<32x16xf32, #tpu.memory_space<vmem>>, vector<1x16xf32>
      %67 = arith.addf %64, %66 : vector<1x16xf32>
      %c2_32 = arith.constant 2 : index
      %68 = arith.index_cast %61 : i32 to index
      %c0_33 = arith.constant 0 : index
      %69 = vector.load %arg15[%c2_32, %68, %c0_33] : memref<4x24x16xf32, #tpu.memory_space<vmem>>, vector<1x1x16xf32>
      %70 = vector.shape_cast %69 : vector<1x1x16xf32> to vector<1x16xf32>
      %71 = vector.shape_cast %67 : vector<1x16xf32> to vector<1x1x16xf32>
      tpu.vector_store %arg15[%c2_32, %68, %c0_33], %71 {strides = array<i32>} : memref<4x24x16xf32, #tpu.memory_space<vmem>>, vector<1x1x16xf32>,
      %c3_i32 = arith.constant 3 : i32
      %72 = arith.addi %29, %c3_i32 : i32
      %73 = arith.addi %3, %72 : i32
      %74 = arith.index_cast %73 : i32 to index
      %75 = memref.load %arg2[%74] : memref<32xi32, #tpu.memory_space<smem>>
      %c3 = arith.constant 3 : index
      %76 = arith.index_cast %75 : i32 to index
      %c0_34 = arith.constant 0 : index
      %77 = vector.load %arg15[%c3, %76, %c0_34] : memref<4x24x16xf32, #tpu.memory_space<vmem>>, vector<1x1x16xf32>
      %78 = vector.shape_cast %77 : vector<1x1x16xf32> to vector<1x16xf32>
      %79 = arith.index_cast %72 : i32 to index
      %c0_35 = arith.constant 0 : index
      %80 = vector.load %arg18[%79, %c0_35] : memref<32x16xf32, #tpu.memory_space<vmem>>, vector<1x16xf32>
      %81 = arith.addf %78, %80 : vector<1x16xf32>
      %c3_36 = arith.constant 3 : index
      %82 = arith.index_cast %75 : i32 to index
      %c0_37 = arith.constant 0 : index
      %83 = vector.load %arg15[%c3_36, %82, %c0_37] : memref<4x24x16xf32, #tpu.memory_space<vmem>>, vector<1x1x16xf32>
      %84 = vector.shape_cast %83 : vector<1x1x16xf32> to vector<1x16xf32>
      %85 = vector.shape_cast %81 : vector<1x16xf32> to vector<1x1x16xf32>
      tpu.vector_store %arg15[%c3_36, %82, %c0_37], %85 {strides = array<i32>} : memref<4x24x16xf32, #tpu.memory_space<vmem>>, vector<1x1x16xf32>,
      %c4_i32_38 = arith.constant 4 : i32
      %86 = arith.addi %29, %c4_i32_38 : i32
      %87 = arith.addi %3, %86 : i32
      %88 = arith.index_cast %87 : i32 to index
      %89 = memref.load %arg2[%88] : memref<32xi32, #tpu.memory_space<smem>>
      %c0_39 = arith.constant 0 : index
      %90 = arith.index_cast %89 : i32 to index
      %c0_40 = arith.constant 0 : index
      %91 = vector.load %arg15[%c0_39, %90, %c0_40] : memref<4x24x16xf32, #tpu.memory_space<vmem>>, vector<1x1x16xf32>
      %92 = vector.shape_cast %91 : vector<1x1x16xf32> to vector<1x16xf32>
      %93 = arith.index_cast %86 : i32 to index
      %c0_41 = arith.constant 0 : index
      %94 = vector.load %arg18[%93, %c0_41] : memref<32x16xf32, #tpu.memory_space<vmem>>, vector<1x16xf32>
      %95 = arith.addf %92, %94 : vector<1x16xf32>
      %c0_42 = arith.constant 0 : index
      %96 = arith.index_cast %89 : i32 to index
      %c0_43 = arith.constant 0 : index
      %97 = vector.load %arg15[%c0_42, %96, %c0_43] : memref<4x24x16xf32, #tpu.memory_space<vmem>>, vector<1x1x16xf32>
      %98 = vector.shape_cast %97 : vector<1x1x16xf32> to vector<1x16xf32>
      %99 = vector.shape_cast %95 : vector<1x16xf32> to vector<1x1x16xf32>
      tpu.vector_store %arg15[%c0_42, %96, %c0_43], %99 {strides = array<i32>} : memref<4x24x16xf32, #tpu.memory_space<vmem>>, vector<1x1x16xf32>,
      %c5_i32 = arith.constant 5 : i32
      %100 = arith.addi %29, %c5_i32 : i32
      %101 = arith.addi %3, %100 : i32
      %102 = arith.index_cast %101 : i32 to index
      %103 = memref.load %arg2[%102] : memref<32xi32, #tpu.memory_space<smem>>
      %c1_44 = arith.constant 1 : index
      %104 = arith.index_cast %103 : i32 to index
      %c0_45 = arith.constant 0 : index
      %105 = vector.load %arg15[%c1_44, %104, %c0_45] : memref<4x24x16xf32, #tpu.memory_space<vmem>>, vector<1x1x16xf32>
      %106 = vector.shape_cast %105 : vector<1x1x16xf32> to vector<1x16xf32>
      %107 = arith.index_cast %100 : i32 to index
      %c0_46 = arith.constant 0 : index
      %108 = vector.load %arg18[%107, %c0_46] : memref<32x16xf32, #tpu.memory_space<vmem>>, vector<1x16xf32>
      %109 = arith.addf %106, %108 : vector<1x16xf32>
      %c1_47 = arith.constant 1 : index
      %110 = arith.index_cast %103 : i32 to index
      %c0_48 = arith.constant 0 : index
      %111 = vector.load %arg15[%c1_47, %110, %c0_48] : memref<4x24x16xf32, #tpu.memory_space<vmem>>, vector<1x1x16xf32>
      %112 = vector.shape_cast %111 : vector<1x1x16xf32> to vector<1x16xf32>
      %113 = vector.shape_cast %109 : vector<1x16xf32> to vector<1x1x16xf32>
      tpu.vector_store %arg15[%c1_47, %110, %c0_48], %113 {strides = array<i32>} : memref<4x24x16xf32, #tpu.memory_space<vmem>>, vector<1x1x16xf32>,
      %c6_i32 = arith.constant 6 : i32
      %114 = arith.addi %29, %c6_i32 : i32
      %115 = arith.addi %3, %114 : i32
      %116 = arith.index_cast %115 : i32 to index
      %117 = memref.load %arg2[%116] : memref<32xi32, #tpu.memory_space<smem>>
      %c2_49 = arith.constant 2 : index
      %118 = arith.index_cast %117 : i32 to index
      %c0_50 = arith.constant 0 : index
      %119 = vector.load %arg15[%c2_49, %118, %c0_50] : memref<4x24x16xf32, #tpu.memory_space<vmem>>, vector<1x1x16xf32>
      %120 = vector.shape_cast %119 : vector<1x1x16xf32> to vector<1x16xf32>
      %121 = arith.index_cast %114 : i32 to index
      %c0_51 = arith.constant 0 : index
      %122 = vector.load %arg18[%121, %c0_51] : memref<32x16xf32, #tpu.memory_space<vmem>>, vector<1x16xf32>
      %123 = arith.addf %120, %122 : vector<1x16xf32>
      %c2_52 = arith.constant 2 : index
      %124 = arith.index_cast %117 : i32 to index
      %c0_53 = arith.constant 0 : index
      %125 = vector.load %arg15[%c2_52, %124, %c0_53] : memref<4x24x16xf32, #tpu.memory_space<vmem>>, vector<1x1x16xf32>
      %126 = vector.shape_cast %125 : vector<1x1x16xf32> to vector<1x16xf32>
      %127 = vector.shape_cast %123 : vector<1x16xf32> to vector<1x1x16xf32>
      tpu.vector_store %arg15[%c2_52, %124, %c0_53], %127 {strides = array<i32>} : memref<4x24x16xf32, #tpu.memory_space<vmem>>, vector<1x1x16xf32>,
      %c7_i32 = arith.constant 7 : i32
      %128 = arith.addi %29, %c7_i32 : i32
      %129 = arith.addi %3, %128 : i32
      %130 = arith.index_cast %129 : i32 to index
      %131 = memref.load %arg2[%130] : memref<32xi32, #tpu.memory_space<smem>>
      %c3_54 = arith.constant 3 : index
      %132 = arith.index_cast %131 : i32 to index
      %c0_55 = arith.constant 0 : index
      %133 = vector.load %arg15[%c3_54, %132, %c0_55] : memref<4x24x16xf32, #tpu.memory_space<vmem>>, vector<1x1x16xf32>
      %134 = vector.shape_cast %133 : vector<1x1x16xf32> to vector<1x16xf32>
      %135 = arith.index_cast %128 : i32 to index
      %c0_56 = arith.constant 0 : index
      %136 = vector.load %arg18[%135, %c0_56] : memref<32x16xf32, #tpu.memory_space<vmem>>, vector<1x16xf32>
      %137 = arith.addf %134, %136 : vector<1x16xf32>
      %c3_57 = arith.constant 3 : index
      %138 = arith.index_cast %131 : i32 to index
      %c0_58 = arith.constant 0 : index
      %139 = vector.load %arg15[%c3_57, %138, %c0_58] : memref<4x24x16xf32, #tpu.memory_space<vmem>>, vector<1x1x16xf32>
      %140 = vector.shape_cast %139 : vector<1x1x16xf32> to vector<1x16xf32>
      %141 = vector.shape_cast %137 : vector<1x16xf32> to vector<1x1x16xf32>
      tpu.vector_store %arg15[%c3_57, %138, %c0_58], %141 {strides = array<i32>} : memref<4x24x16xf32, #tpu.memory_space<vmem>>, vector<1x1x16xf32>,
    }
    %c4_i32_16 = arith.constant 4 : i32
    %c0_i32_17 = arith.constant 0 : i32
    %25 = arith.cmpi eq, %arg0, %c0_i32_17 : i32
    %26 = arith.extui %25 : i1 to i32
    %c0_i32_18 = arith.constant 0 : i32
    %27 = arith.cmpi ne, %26, %c0_i32_18 : i32
    scf.if %27 {
      %c0_19 = arith.constant 0 : index
      %c0_20 = arith.constant 0 : index
      %c0_21 = arith.constant 0 : index
      %28 = vector.load %arg15[%c0_19, %c0_20, %c0_21] : memref<4x24x16xf32, #tpu.memory_space<vmem>>, vector<1x16x16xf32>
      %29 = vector.shape_cast %28 : vector<1x16x16xf32> to vector<16x16xf32>
      %c1 = arith.constant 1 : index
      %c0_22 = arith.constant 0 : index
      %c0_23 = arith.constant 0 : index
      %30 = vector.load %arg15[%c1, %c0_22, %c0_23] : memref<4x24x16xf32, #tpu.memory_space<vmem>>, vector<1x16x16xf32>
      %31 = vector.shape_cast %30 : vector<1x16x16xf32> to vector<16x16xf32>
      %32 = arith.addf %29, %31 : vector<16x16xf32>
      %c2 = arith.constant 2 : index
      %c0_24 = arith.constant 0 : index
      %c0_25 = arith.constant 0 : index
      %33 = vector.load %arg15[%c2, %c0_24, %c0_25] : memref<4x24x16xf32, #tpu.memory_space<vmem>>, vector<1x16x16xf32>
      %34 = vector.shape_cast %33 : vector<1x16x16xf32> to vector<16x16xf32>
      %35 = arith.addf %32, %34 : vector<16x16xf32>
      %c3 = arith.constant 3 : index
      %c0_26 = arith.constant 0 : index
      %c0_27 = arith.constant 0 : index
      %36 = vector.load %arg15[%c3, %c0_26, %c0_27] : memref<4x24x16xf32, #tpu.memory_space<vmem>>, vector<1x16x16xf32>
      %37 = vector.shape_cast %36 : vector<1x16x16xf32> to vector<16x16xf32>
      %38 = arith.addf %35, %37 : vector<16x16xf32>
      %c0_28 = arith.constant 0 : index
      %c0_29 = arith.constant 0 : index
      %39 = vector.load %arg14[%c0_28, %c0_29] : memref<24x16xf32, #tpu.memory_space<vmem>>, vector<16x16xf32>
      %40 = arith.addf %38, %39 : vector<16x16xf32>
      %c0_30 = arith.constant 0 : index
      %c0_31 = arith.constant 0 : index
      %41 = vector.load %arg8[%c0_30, %c0_31] : memref<1x16xf32, #tpu.memory_space<vmem>>, vector<1x16xf32>
      %42 = vector.broadcast %41 : vector<1x16xf32> to vector<16x16xf32>
      %43 = arith.addf %40, %42 : vector<16x16xf32>
      %cst_32 = arith.constant dense<0.000000e+00> : vector<16xf32>
      %44 = vector.multi_reduction <add>, %43, %cst_32 [0] : vector<16x16xf32> to vector<16xf32>
      %45 = vector.shape_cast %44 : vector<16xf32> to vector<1x16xf32>
      %cst_33 = arith.constant 1.600000e+01 : f32
      %46 = vector.broadcast %cst_33 : f32 to vector<1x16xf32>
      %47 = arith.divf %45, %46 : vector<1x16xf32>
      %48 = vector.broadcast %47 : vector<1x16xf32> to vector<16x16xf32>
      %49 = arith.subf %43, %48 : vector<16x16xf32>
      %50 = arith.mulf %49, %49 : vector<16x16xf32>
      %cst_34 = arith.constant dense<0.000000e+00> : vector<16xf32>
      %51 = vector.multi_reduction <add>, %50, %cst_34 [0] : vector<16x16xf32> to vector<16xf32>
      %52 = vector.shape_cast %51 : vector<16xf32> to vector<1x16xf32>
      %cst_35 = arith.constant 1.600000e+01 : f32
      %53 = vector.broadcast %cst_35 : f32 to vector<1x16xf32>
      %54 = arith.divf %52, %53 : vector<1x16xf32>
      %cst_36 = arith.constant 9.99999974E-6 : f32
      %55 = vector.broadcast %cst_36 : f32 to vector<1x16xf32>
      %56 = arith.addf %54, %55 : vector<1x16xf32>
      %57 = math.rsqrt %56 : vector<1x16xf32>
      %58 = vector.broadcast %57 : vector<1x16xf32> to vector<16x16xf32>
      %59 = arith.mulf %49, %58 : vector<16x16xf32>
      %c0_37 = arith.constant 0 : index
      %c0_38 = arith.constant 0 : index
      %60 = vector.load %arg9[%c0_37, %c0_38] : memref<1x16xf32, #tpu.memory_space<vmem>>, vector<1x16xf32>
      %61 = vector.broadcast %60 : vector<1x16xf32> to vector<16x16xf32>
      %62 = arith.mulf %61, %59 : vector<16x16xf32>
      %c0_39 = arith.constant 0 : index
      %c0_40 = arith.constant 0 : index
      %63 = vector.load %arg10[%c0_39, %c0_40] : memref<1x16xf32, #tpu.memory_space<vmem>>, vector<1x16xf32>
      %64 = vector.broadcast %63 : vector<1x16xf32> to vector<16x16xf32>
      %65 = arith.addf %62, %64 : vector<16x16xf32>
      %c0_41 = arith.constant 0 : index
      %c0_42 = arith.constant 0 : index
      %66 = vector.load %arg3[%c0_41, %c0_42] : memref<24x16xf32, #tpu.memory_space<vmem>>, vector<16x16xf32>
      %cst_43 = arith.constant 0.000000e+00 : f32
      %67 = vector.broadcast %cst_43 : f32 to vector<16x16xf32>
      %68 = arith.maximumf %65, %67 : vector<16x16xf32>
      %69 = arith.addf %66, %68 : vector<16x16xf32>
      %c0_44 = arith.constant 0 : index
      %c0_45 = arith.constant 0 : index
      %70 = vector.load %arg11[%c0_44, %c0_45] : memref<16x16xf32, #tpu.memory_space<vmem>>, vector<16x16xf32>
      tpu.vector_store %arg11[%c0_44, %c0_45], %69 {strides = array<i32>} : memref<16x16xf32, #tpu.memory_space<vmem>>, vector<16x16xf32>,
    } else {
    }
    return
  }
  func.func @transform_0(%arg0: i32, %arg1: memref<32xi32, #tpu.memory_space<smem>>, %arg2: memref<32xi32, #tpu.memory_space<smem>>) -> (i32, i32) {
    %c0_i32 = arith.constant 0 : i32
    %c0_i32_0 = arith.constant 0 : i32
    %c0_i32_1 = arith.constant 0 : i32
    return %c0_i32, %c0_i32_0 : i32, i32
  }
  func.func @transform_1(%arg0: i32, %arg1: memref<32xi32, #tpu.memory_space<smem>>, %arg2: memref<32xi32, #tpu.memory_space<smem>>) -> (i32, i32) {
    %c0_i32 = arith.constant 0 : i32
    %c0_i32_0 = arith.constant 0 : i32
    %c0_i32_1 = arith.constant 0 : i32
    return %c0_i32, %c0_i32_0 : i32, i32
  }
  func.func @transform_2(%arg0: i32, %arg1: memref<32xi32, #tpu.memory_space<smem>>, %arg2: memref<32xi32, #tpu.memory_space<smem>>) -> (i32, i32) {
    %c0_i32 = arith.constant 0 : i32
    %c0_i32_0 = arith.constant 0 : i32
    %c0_i32_1 = arith.constant 0 : i32
    return %c0_i32, %c0_i32_0 : i32, i32
  }
  func.func @transform_3(%arg0: i32, %arg1: memref<32xi32, #tpu.memory_space<smem>>, %arg2: memref<32xi32, #tpu.memory_space<smem>>) -> (i32, i32) {
    %c0_i32 = arith.constant 0 : i32
    %c0_i32_0 = arith.constant 0 : i32
    return %arg0, %c0_i32 : i32, i32
  }
  func.func @transform_4(%arg0: i32, %arg1: memref<32xi32, #tpu.memory_space<smem>>, %arg2: memref<32xi32, #tpu.memory_space<smem>>) -> (i32, i32) {
    %c0_i32 = arith.constant 0 : i32
    %c0_i32_0 = arith.constant 0 : i32
    %c0_i32_1 = arith.constant 0 : i32
    return %c0_i32, %c0_i32_0 : i32, i32
  }
  func.func @transform_5(%arg0: i32, %arg1: memref<32xi32, #tpu.memory_space<smem>>, %arg2: memref<32xi32, #tpu.memory_space<smem>>) -> (i32, i32) {
    %c0_i32 = arith.constant 0 : i32
    %c0_i32_0 = arith.constant 0 : i32
    %c0_i32_1 = arith.constant 0 : i32
    return %c0_i32, %c0_i32_0 : i32, i32
  }
  func.func @transform_6(%arg0: i32, %arg1: memref<32xi32, #tpu.memory_space<smem>>, %arg2: memref<32xi32, #tpu.memory_space<smem>>) -> (i32, i32) {
    %c0_i32 = arith.constant 0 : i32
    %c0_i32_0 = arith.constant 0 : i32
    %c0_i32_1 = arith.constant 0 : i32
    return %c0_i32, %c0_i32_0 : i32, i32
  }
  func.func @transform_7(%arg0: i32, %arg1: memref<32xi32, #tpu.memory_space<smem>>, %arg2: memref<32xi32, #tpu.memory_space<smem>>) -> (i32, i32) {
    %c0_i32 = arith.constant 0 : i32
    %c0_i32_0 = arith.constant 0 : i32
    %c0_i32_1 = arith.constant 0 : i32
    return %c0_i32, %c0_i32_0 : i32, i32
  }
  func.func @transform_8(%arg0: i32, %arg1: memref<32xi32, #tpu.memory_space<smem>>, %arg2: memref<32xi32, #tpu.memory_space<smem>>) -> (i32, i32) {
    %c0_i32 = arith.constant 0 : i32
    %c0_i32_0 = arith.constant 0 : i32
    %c0_i32_1 = arith.constant 0 : i32
    return %c0_i32, %c0_i32_0 : i32, i32
  }
}

</mosaic_0001>

<bundles_post_ra>
// kernel: tpu_custom_call.1
= control target key start
LH: loop header
LB: loop body
LE: loop exit
PB: predicated region body
PF: predicated region fallthrough
CT: control target
= control target key end

     0   :  { %s904_s19 = smov [#allocation10]   ;;  %s905_s20 = smov [#allocation11]   ;;  %s1172_s0 = inlined_call_operand.vmem [shape: s32[32], index: 0, kind: input, shape index: {}]   ;;  %s1173_s2 = inlined_call_operand.vmem [shape: f32[24,16], index: 2, kind: input, shape index: {}]   ;;  %s1174_s3 = inlined_call_operand.vmem [shape: f32[16,64], index: 3, kind: input, shape index: {}]   ;;  %s1175_s4 = inlined_call_operand.vmem [shape: f32[1,64], index: 4, kind: input, shape index: {}]   ;;  %s1176_s5 = inlined_call_operand.vmem [shape: f32[32,16], index: 5, kind: input, shape index: {}]   ;;  %s1177_s6 = inlined_call_operand.vmem [shape: f32[16,32], index: 6, kind: input, shape index: {}]   ;;  %s1178_s7 = inlined_call_operand.vmem [shape: f32[1,16], index: 7, kind: input, shape index: {}]   ;;  %s1179_s8 = inlined_call_operand.vmem [shape: f32[1,16], index: 8, kind: input, shape index: {}]   ;;  %s1180_s9 = inlined_call_operand.vmem [shape: f32[1,16], index: 9, kind: input, shape index: {}]   ;;  %s1181_s10 = inlined_call_operand.hbm [shape: f32[16,16], index: 10, kind: output, shape index: {}]   ;;  %s1182_s1 = inlined_call_operand.vmem [shape: s32[32], index: 1, kind: input, shape index: {}]  }
   0x1   :  { %s16_s15 = sshll.u32 %s1172_s0, 4  ;;  %s21_s18 = sshll.u32 %s1182_s1, 4  ;;  %s17_s15 = int_to_ptr.vmem [resolvable:$true] %s16_s15  ;;  %s22_s18 = int_to_ptr.vmem [resolvable:$true] %s21_s18 }
   0x2   :  { %19 = dma.vmem_to_smem %s17_s15, 16, %s904_s19, [#allocation9] }
   0x3   :  { %24 = dma.vmem_to_smem %s22_s18, 16, %s905_s20, [#allocation9] }
   0x4   :  { %892 = dma.done.wait [#allocation9], 32 }
   0x5   :  { %893 = vsyncadd [#allocation9], 4294967264 }
   0x6   :  { %27 = sfence }
   0x7   :  { %28 = vsyncpa [#allocation13], 0  ;;  %v53_v0 = vld [vmem:[%s1174_s3 + $0x8] sm:$0xff]  ;;  %v52_v1 = vld [vmem:[%s1174_s3] sm:$0xff]  ;;  %vm58_vm0 = vcmask 130048   ;;  %v906_v3 = vmov 0.0  }
   0x8   :  { %82 = vmatpush.msra.mxu0 %v53_v0  ;;  %783 = vmatpush.msra.mxu3 %v53_v0  ;;  %v49_v2 = vld [vmem:[%s1173_s2] sm:$0xff]  ;;  %125 = vst.msk [vmem:[#allocation5] sm:$0xff] %vm58_vm0, %v906_v3  ;;  %v50_v4 = vld [vmem:[%s1173_s2 + $0x8] sm:$0xff]  ;;  %v51_v5 = vld [vmem:[%s1173_s2 + $0x10] sm:$0xff]  ;;  %s907_s30 = smov 112   ;;  %s908_s11 = smov 80  }
   0x9   :  { %126 = vst.msk [vmem:[#allocation5 + $0x8] sm:$0xff] %vm58_vm0, %v906_v3  ;;  %v812_v6 = vld [vmem:[%s1175_s4] ss:$0 sm:$0xff]  ;;  %vm109_vm1 = vcmask 261120   ;;  %s1015_s4 = smov 0  }
   0xa   :  { %83 = vmatpush.msra.mxu0 %v52_v1  ;;  %784 = vmatpush.msra.mxu3 %v52_v1  ;;  %127 = vst.msk [vmem:[#allocation5 + $0x10] sm:$0xff] %vm58_vm0, %v906_v3 }
   0xb   :  { %716 = vmatmul.msk.f32.vlgmr.msra.gmra.mxu0 %vm58_vm0, %v49_v2  ;;  %128 = vst.msk [vmem:[#allocation5 + $0x18] sm:$0xff] %vm58_vm0, %v906_v3  ;;  %717 = vmatmul.msk.f32.vlgmr.msra.gmra.mxu3 %vm58_vm0, %v50_v4 }
   0xc   :  { %129 = vst.msk [vmem:[#allocation5 + $0x20] sm:$0xff] %vm58_vm0, %v906_v3 }
   0xd   :  { %130 = vst.msk [vmem:[#allocation5 + $0x28] sm:$0xff] %vm58_vm0, %v906_v3 }
   0xe   :  { %131 = vst.msk [vmem:[#allocation5 + $0x30] sm:$0xff] %vm58_vm0, %v906_v3 }
   0xf   :  { %132 = vst.msk [vmem:[#allocation5 + $0x38] sm:$0xff] %vm58_vm0, %v906_v3 }
  0x10   :  { %133 = vst.msk [vmem:[#allocation5 + $0x40] sm:$0xff] %vm58_vm0, %v906_v3 }
  0x11   :  { %134 = vst.msk [vmem:[#allocation5 + $0x48] sm:$0xff] %vm58_vm0, %v906_v3 }
  0x12   :  { %135 = vst.msk [vmem:[#allocation5 + $0x50] sm:$0xff] %vm58_vm0, %v906_v3 }
  0x13   :  { %136 = vst.msk [vmem:[#allocation5 + $0x58] sm:$0xff] %vm58_vm0, %v906_v3  ;;  %718 = vmatmul.msk.f32.gmra.mxu3 %vm58_vm0, %v51_v5 }
  0x88   :  { %v85_v7 = vpop.f32.mrf.mxu0 }
  0x89   :  { %v86_v8 = vadd.f32 %v812_v6, %v85_v7 }
  0x8b   :  { %94 = vst.msk [vmem:[#allocation2] sm:$0xff] %vm58_vm0, %v86_v8  ;;  %100 = vrot.lane.b32.xlu0 %v86_v8, %s907_s30 }
  0x8e   :  { %v88_v9 = vpop.f32.mrf.mxu3 }
  0x8f   :  { %v89_v10 = vadd.f32 %v812_v6, %v88_v9 }
  0x91   :  { %95 = vst.msk [vmem:[#allocation2 + $0x8] sm:$0xff] %vm58_vm0, %v89_v10  ;;  %115 = vrot.lane.b32.xlu2 %v89_v10, %s908_s11 }
  0x93   :  { %102 = vrot.lane.b32.xlu0 %v89_v10, %s907_s30 }
  0x96   :  { %v91_v11 = vpop.f32.mrf.mxu3 }
  0x97   :  { %v92_v12 = vadd.f32 %v812_v6, %v91_v11 }
  0x99   :  { %96 = vst.msk [vmem:[#allocation2 + $0x10] sm:$0xff] %vm58_vm0, %v92_v12  ;;  %104 = vrot.lane.b32.xlu1 %v92_v12, %s907_s30  ;;  %117 = vrot.lane.b32.xlu2 %v92_v12, %s908_s11 }
  0xa1   :  { %113 = vrot.lane.b32.xlu1 %v86_v8, %s908_s11 }
  0xeb   :  { %v116_v13 = vpop.permute.xlu2 %115 }
  0xec   :  { %123 = vst.msk [vmem:[#allocation4 + $0x8] sm:$0xff] %vm58_vm0, %v116_v13 }
  0xf3   :  { %v118_v14 = vpop.permute.xlu2 %117 }
  0xfd   :  { %v101_v15 = vpop.permute.xlu0 %100 }
  0xfe   :  { %110 = vst.msk [vmem:[#allocation3] sm:$0xff] %vm109_vm1, %v101_v15 }
 0x105   :  { %v103_v16 = vpop.permute.xlu0 %102 }
 0x106   :  { %111 = vst.msk [vmem:[#allocation3 + $0x8] sm:$0xff] %vm109_vm1, %v103_v16 }
 0x10b   :  { %v105_v17 = vpop.permute.xlu1 %104 }
 0x10c   :  { %112 = vst.msk [vmem:[#allocation3 + $0x10] sm:$0xff] %vm109_vm1, %v105_v17 }
 0x113   :  { %v114_v18 = vpop.permute.xlu1 %113 }
 0x114   :  { %122 = vst.msk [vmem:[#allocation4] sm:$0xff] %vm58_vm0, %v114_v18 }
 0x115 LB: > { %s1021_s12 = sshll.u32 %s898_s4, 3  ;;  %vm151_vm2 = vcmask 122880   ;;  %vm156_vm3 = vcmask 253952   ;;  %s143_s4 = sadd.s32 1, %s898_s4   ;;  %s898_s4 = sphi %s1015_s4, %s143_s4  }
 0x116   : > { %s147_s13 = sld [smem:[#allocation11 + %s1021_s12]]  ;;  %s158_s15 = sadd.s32 1, %s1021_s12 }
 0x117   : > { %s146_s14 = sld [smem:[#allocation10 + %s1021_s12]]  ;;  %s170_s16 = sadd.s32 2, %s1021_s12 }
 0x118   : > { %s161_s17 = sld [smem:[#allocation11 + %s158_s15]]  ;;  %s182_s18 = sadd.s32 3, %s1021_s12 }
 0x119   : > { %s160_s19 = sld [smem:[#allocation10 + %s158_s15]]  ;;  %s194_s20 = sadd.s32 4, %s1021_s12 }
 0x11a   : > { %s173_s21 = sld [smem:[#allocation11 + %s170_s16]]  ;;  %s206_s22 = sadd.s32 5, %s1021_s12 }
 0x11b   : > { %s172_s23 = sld [smem:[#allocation10 + %s170_s16]]  ;;  %s1031_s24 = scalar_lea.vmem [#allocation6], %s1021_s12 }
 0x11c   : > { %s148_s0 = scalar_lea.vmem [#allocation2], %s147_s13  ;;  %s185_s1 = sld [smem:[#allocation11 + %s182_s18]] }
 0x11d   : > { %v149_v19 = vld [vmem:[%s148_s0] sm:$0x1]  ;;  %s153_s25 = scalar_lea.vmem [#allocation3], %s146_s14  ;;  %s184_s26 = sld [smem:[#allocation10 + %s182_s18]] }
 0x11e   : > { %152 = vst.msk [vmem:[%s1031_s24] sm:$0x1] %vm151_vm2, %v149_v19  ;;  %v154_v20 = vld [vmem:[%s153_s25] sm:$0x1]  ;;  %s218_s3 = sadd.s32 6, %s1021_s12  ;;  %s1037_s27 = scalar_lea.vmem [#allocation7], %s1021_s12 }
 0x11f   : > { %157 = vst.msk [vmem:[%s1037_s27] sm:$0x1] %vm156_vm3, %v154_v20  ;;  %s197_s28 = sld [smem:[#allocation11 + %s194_s20]]  ;;  %s162_s29 = scalar_lea.vmem [#allocation2], %s161_s17 }
 0x120   : > { %v163_v21 = vld [vmem:[%s162_s29] sm:$0x1]  ;;  %s196_s11 = sld [smem:[#allocation10 + %s194_s20]]  ;;  %s166_s13 = scalar_lea.vmem [#allocation3], %s160_s19 }
 0x121   : > { %721 = vst.msk [vmem:[%s1031_s24 + $0x1] sm:$0x1] %vm151_vm2, %v163_v21  ;;  %v167_v22 = vld [vmem:[%s166_s13] sm:$0x1]  ;;  %s209_s14 = sld [smem:[#allocation11 + %s206_s22]]  ;;  %s174_s15 = scalar_lea.vmem [#allocation2], %s173_s21 }
 0x122   : > { %723 = vst.msk [vmem:[%s1037_s27 + $0x1] sm:$0x1] %vm156_vm3, %v167_v22  ;;  %v175_v23 = vld [vmem:[%s174_s15] sm:$0x1]  ;;  %s208_s16 = sld [smem:[#allocation10 + %s206_s22]]  ;;  %s178_s18 = scalar_lea.vmem [#allocation3], %s172_s23 }
 0x123   : > { %725 = vst.msk [vmem:[%s1031_s24 + $0x2] sm:$0x1] %vm151_vm2, %v175_v23  ;;  %v179_v24 = vld [vmem:[%s178_s18] sm:$0x1]  ;;  %s221_s17 = sld [smem:[#allocation11 + %s218_s3]]  ;;  %s186_s20 = scalar_lea.vmem [#allocation2], %s185_s1 }
 0x124   : > { %727 = vst.msk [vmem:[%s1037_s27 + $0x2] sm:$0x1] %vm156_vm3, %v179_v24  ;;  %v187_v25 = vld [vmem:[%s186_s20] sm:$0x1]  ;;  %s220_s19 = sld [smem:[#allocation10 + %s218_s3]]  ;;  %s190_s0 = scalar_lea.vmem [#allocation3], %s184_s26 }
 0x125   : > { %729 = vst.msk [vmem:[%s1031_s24 + $0x3] sm:$0x1] %vm151_vm2, %v187_v25  ;;  %v191_v26 = vld [vmem:[%s190_s0] sm:$0x1]  ;;  %s230_s21 = sadd.s32 7, %s1021_s12  ;;  %s198_s22 = scalar_lea.vmem [#allocation2], %s197_s28 }
 0x126   : > { %731 = vst.msk [vmem:[%s1037_s27 + $0x3] sm:$0x1] %vm156_vm3, %v191_v26  ;;  %v199_v27 = vld [vmem:[%s198_s22] sm:$0x1]  ;;  %s233_s23 = sld [smem:[#allocation11 + %s230_s21]]  ;;  %s202_s25 = scalar_lea.vmem [#allocation3], %s196_s11 }
 0x127   : > { %733 = vst.msk [vmem:[%s1031_s24 + $0x4] sm:$0x1] %vm151_vm2, %v199_v27  ;;  %v203_v28 = vld [vmem:[%s202_s25] sm:$0x1]  ;;  %s232_s1 = sld [smem:[#allocation10 + %s230_s21]]  ;;  %s210_s3 = scalar_lea.vmem [#allocation2], %s209_s14 }
 0x128   : > { %735 = vst.msk [vmem:[%s1037_s27 + $0x4] sm:$0x1] %vm156_vm3, %v203_v28  ;;  %v211_v29 = vld [vmem:[%s210_s3] sm:$0x1]  ;;  %s214_s12 = scalar_lea.vmem [#allocation3], %s208_s16  ;;  %p140_p0 = scmp.ge.s32.totalorder %s143_s4, 4  }
 0x129   : > { %737 = vst.msk [vmem:[%s1031_s24 + $0x5] sm:$0x1] %vm151_vm2, %v211_v29  ;;  %v215_v30 = vld [vmem:[%s214_s12] sm:$0x1]  ;;  %s222_s26 = scalar_lea.vmem [#allocation2], %s221_s17  ;;  %v247_v35 = vld [vmem:[%s1177_s6 + $0x8] sm:$0xff] (%p140_p0) }
 0x12a   : > { %739 = vst.msk [vmem:[%s1037_s27 + $0x5] sm:$0x1] %vm156_vm3, %v215_v30  ;;  %v223_v31 = vld [vmem:[%s222_s26] sm:$0x1]  ;;  %s226_s28 = scalar_lea.vmem [#allocation3], %s220_s19  ;;  %275 = vmatpush.msra.mxu1 (%p140_p0), %v247_v35  ;;  %785 = vmatpush.msra.mxu2 (%p140_p0), %v247_v35  ;;  %v244_v38 = vld [vmem:[%s1176_s5 + $0x10] sm:$0xff] (%p140_p0) }
 0x12b   : > { %741 = vst.msk [vmem:[%s1031_s24 + $0x6] sm:$0x1] %vm151_vm2, %v223_v31  ;;  %v227_v32 = vld [vmem:[%s226_s28] sm:$0x1]  ;;  %142 = sbr.rel (!%p140_p0) target bundleno = 277 (0x115), region = 125  ;;  %v243_v39 = vld [vmem:[%s1176_s5 + $0x8] sm:$0xff] (%p140_p0) }
 0x12c   : > { %743 = vst.msk [vmem:[%s1037_s27 + $0x6] sm:$0x1] %vm156_vm3, %v227_v32  ;;  %s234_s29 = scalar_lea.vmem [#allocation2], %s233_s23  ;;  %v246_v36 = vld [vmem:[%s1177_s6] sm:$0xff] (%p140_p0)  ;;  %v245_v40 = vld [vmem:[%s1176_s5 + $0x18] sm:$0xff] (%p140_p0) }
 0x12d   : > { %v235_v33 = vld [vmem:[%s234_s29] sm:$0x1]  ;;  %s238_s11 = scalar_lea.vmem [#allocation3], %s232_s1  ;;  %276 = vmatpush.msra.mxu1 (%p140_p0), %v246_v36  ;;  %786 = vmatpush.msra.mxu2 (%p140_p0), %v246_v36 }
 0x12e   : > { %745 = vst.msk [vmem:[%s1031_s24 + $0x7] sm:$0x1] %vm151_vm2, %v235_v33  ;;  %v239_v34 = vld [vmem:[%s238_s11] sm:$0x1]  ;;  %750 = vmatmul.msk.f32.vlgmr.msra.gmra.mxu2 (%p140_p0), %vm58_vm0, %v244_v38 }
 0x12f   : > { %747 = vst.msk [vmem:[%s1037_s27 + $0x7] sm:$0x1] %vm156_vm3, %v239_v34  ;;  %v242_v37 = vld [vmem:[%s1176_s5] sm:$0xff] (%p140_p0)  ;;  %s1110_s5 = smov (%p140_p0), 0  }
 0x130   :  { %748 = vmatmul.msk.f32.vlgmr.msra.gmra.mxu1 %vm58_vm0, %v242_v37 }
 0x135   :  { %v294_v42 = vld [vmem:[#allocation6] sm:$0xff]  ;;  %v296_v46 = vld [vmem:[#allocation6 + $0x10] sm:$0xff]  ;;  %v295_v50 = vld [vmem:[#allocation6 + $0x8] sm:$0xff] }
 0x136   :  { %751 = vmatmul.msk.f32.gmra.mxu2 %vm58_vm0, %v245_v40  ;;  %v290_v41 = vld [vmem:[#allocation7] sm:$0xff]  ;;  %v292_v45 = vld [vmem:[#allocation7 + $0x10] sm:$0xff]  ;;  %v291_v49 = vld [vmem:[#allocation7 + $0x8] sm:$0xff] }
 0x137   :  { %v298_v43 = vadd.f32 %v294_v42, %v290_v41  ;;  %v300_v51 = vadd.f32 %v296_v46, %v292_v45  ;;  %v299_v52 = vadd.f32 %v295_v50, %v291_v49  ;;  %v293_v57 = vld [vmem:[#allocation7 + $0x18] sm:$0xff] }
 0x138   :  { %749 = vmatmul.msk.f32.gmra.mxu1 %vm58_vm0, %v243_v39  ;;  %v297_v58 = vld [vmem:[#allocation6 + $0x18] sm:$0xff] }
 0x139   :  { %v301_v61 = vadd.f32 %v297_v58, %v293_v57 }
 0x1ad   :  { %v278_v44 = vpop.f32.mrf.mxu1 }
 0x1ae   :  { %v306_v47 = vadd.f32 %v290_v41, %v278_v44  ;;  %v302_v48 = vadd.f32 %v298_v43, %v278_v44 }
 0x1b0   :  { %390 = vrot.lane.b32.xlu0 %v306_v47, %s907_s30  ;;  %v752_v1 = vmul.f32 -1.442695, %v302_v48 }
 0x1b1   :  { %v284_v53 = vpop.f32.mrf.mxu2 }
 0x1b2   :  { %v308_v54 = vadd.f32 %v292_v45, %v284_v53  ;;  %v304_v55 = vadd.f32 %v300_v51, %v284_v53  ;;  %813 = vpow2.f32 %v752_v1 }
 0x1b4   :  { %394 = vrot.lane.b32.xlu1 %v308_v54, %s907_s30  ;;  %v754_v2 = vmul.f32 -1.442695, %v304_v55 }
 0x1b5   :  { %v281_v56 = vpop.f32.mrf.mxu1 }
 0x1b6   :  { %v303_v59 = vadd.f32 %v299_v52, %v281_v56  ;;  %v307_v60 = vadd.f32 %v291_v49, %v281_v56  ;;  %815 = vpow2.f32 %v754_v2 }
 0x1b8   :  { %392 = vrot.lane.b32.xlu0 %v307_v60, %s907_s30  ;;  %v753_v3 = vmul.f32 -1.442695, %v303_v59  ;;  %v814_v4 = vpop.eup %813 }
 0x1b9   :  { %v287_v62 = vpop.f32.mrf.mxu2  ;;  %v322_v5 = vadd.f32 1.0, %v814_v4 }
 0x1ba   :  { %v305_v63 = vadd.f32 %v301_v61, %v287_v62  ;;  %v309_v0 = vadd.f32 %v293_v57, %v287_v62  ;;  %817 = vpow2.f32 %v753_v3 }
 0x1bb   :  { %819 = vrcp.f32 %v322_v5  ;;  %vm331_vm4 = vweird.f32 %v322_v5  ;;  %v337_v25 = vand.u32 2147483648, %v322_v5  ;;  %v335_v26 = vand.u32 2147483647, %v322_v5 }
 0x1bc   :  { %396 = vrot.lane.b32.xlu1 %v309_v0, %s907_s30  ;;  %v755_v6 = vmul.f32 -1.442695, %v305_v63  ;;  %v816_v7 = vpop.eup %815 }
 0x1bd   :  { %v324_v9 = vadd.f32 1.0, %v816_v7  ;;  %v338_v31 = vor.u32 1.1754944e-38, %v337_v25  ;;  %vm336_vm7 = vcmp.eq.f32.partialorder %v335_v26, 8.507059e+37 }
 0x1be   :  { %821 = vpow2.f32 %v755_v6 }
 0x1bf   :  { %823 = vrcp.f32 %v324_v9  ;;  %vm361_vm9 = vweird.f32 %v324_v9  ;;  %v365_v36 = vand.u32 2147483647, %v324_v9  ;;  %v367_v37 = vand.u32 2147483648, %v324_v9 }
 0x1c0   :  { %v818_v8 = vpop.eup %817 }
 0x1c1   :  { %v323_v10 = vadd.f32 1.0, %v818_v8  ;;  %v820_v11 = vpop.eup %819  ;;  %v368_v44 = vor.u32 1.1754944e-38, %v367_v37  ;;  %vm366_vm14 = vcmp.eq.f32.partialorder %v365_v36, 8.507059e+37 }
 0x1c2   :  { %v327_v13 = vmul.f32 %v820_v11, %v322_v5  ;;  %vm332_vm5 = vweird.f32 %v820_v11 }
 0x1c3   :  { %825 = vrcp.f32 %v323_v10  ;;  %vm333_vm6 = vmor %vm331_vm4, %vm332_vm5  ;;  %vm346_vm10 = vweird.f32 %v323_v10  ;;  %v352_v40 = vand.u32 2147483648, %v323_v10  ;;  %v350_v42 = vand.u32 2147483647, %v323_v10 }
 0x1c4   :  { %v822_v12 = vpop.eup %821  ;;  %v328_v16 = vsub.f32 1.0, %v327_v13 }
 0x1c5   :  { %v1099_v14 = vadd.f32 1.0, %v822_v12  ;;  %v824_v15 = vpop.eup %823  ;;  %v353_v48 = vor.u32 1.1754944e-38, %v352_v40  ;;  %vm351_vm15 = vcmp.eq.f32.partialorder %v350_v42, 8.507059e+37 }
 0x1c6   :  { %v357_v18 = vmul.f32 %v824_v15, %v324_v9  ;;  %v329_v19 = vmul.f32 %v820_v11, %v328_v16  ;;  %vm362_vm8 = vweird.f32 %v824_v15 }
 0x1c7   :  { %827 = vrcp.f32 %v1099_v14  ;;  %vm363_vm12 = vmor %vm361_vm9, %vm362_vm8  ;;  %v382_v53 = vand.u32 2147483648, %v1099_v14  ;;  %vm376_vm3 = vweird.f32 %v1099_v14  ;;  %v380_v55 = vand.u32 2147483647, %v1099_v14 }
 0x1c8   :  { %v358_v21 = vsub.f32 1.0, %v357_v18  ;;  %v330_v23 = vadd.f32 %v820_v11, %v329_v19 }
 0x1c9   :  { %v826_v17 = vpop.eup %825  ;;  %v383_v57 = vor.u32 1.1754944e-38, %v382_v53  ;;  %vm381_vm5 = vcmp.eq.f32.partialorder %v380_v55, 8.507059e+37 }
 0x1ca   :  { %v342_v20 = vmul.f32 %v826_v17, %v323_v10  ;;  %v359_v27 = vmul.f32 %v824_v15, %v358_v21  ;;  %v334_v29 = vsel %vm333_vm6, %v820_v11, %v330_v23  ;;  %vm347_vm11 = vweird.f32 %v826_v17 }
 0x1cb   :  { %v339_v35 = vsel %vm336_vm7, %v338_v31, %v334_v29  ;;  %vm348_vm13 = vmor %vm346_vm10, %vm347_vm11 }
 0x1cc   :  { %v343_v24 = vsub.f32 1.0, %v342_v20  ;;  %v360_v32 = vadd.f32 %v824_v15, %v359_v27 }
 0x1cd   :  { %v828_v22 = vpop.eup %827 }
 0x1ce   :  { %v372_v28 = vmul.f32 %v828_v22, %v1099_v14  ;;  %v344_v30 = vmul.f32 %v826_v17, %v343_v24  ;;  %v364_v41 = vsel %vm363_vm12, %v824_v15, %v360_v32  ;;  %vm377_vm1 = vweird.f32 %v828_v22 }
 0x1cf   :  { %v369_v47 = vsel %vm366_vm14, %v368_v44, %v364_v41  ;;  %vm378_vm4 = vmor %vm376_vm3, %vm377_vm1 }
 0x1d0   :  { %v373_v33 = vsub.f32 1.0, %v372_v28  ;;  %v345_v39 = vadd.f32 %v826_v17, %v344_v30 }
 0x1d2   :  { %v374_v43 = vmul.f32 %v828_v22, %v373_v33  ;;  %v349_v45 = vsel %vm348_vm13, %v826_v17, %v345_v39 }
 0x1d3   :  { %v354_v52 = vsel %vm351_vm15, %v353_v48, %v349_v45 }
 0x1d4   :  { %v375_v50 = vadd.f32 %v828_v22, %v374_v43 }
 0x1d6   :  { %v379_v56 = vsel %vm378_vm4, %v828_v22, %v375_v50 }
 0x1d7   :  { %v384_v59 = vsel %vm381_vm5, %v383_v57, %v379_v56 }
 0x222   :  { %v391_v34 = vpop.permute.xlu0 %390 }
 0x223   :  { %v402_v38 = vmul.f32 %v391_v34, %v339_v35 }
 0x225   :  { %406 = vst.msk [vmem:[#allocation8] sm:$0xff] %vm58_vm0, %v402_v38 }
 0x226   :  { %v395_v46 = vpop.permute.xlu1 %394 }
 0x227   :  { %v404_v49 = vmul.f32 %v395_v46, %v369_v47 }
 0x229   :  { %408 = vst.msk [vmem:[#allocation8 + $0x10] sm:$0xff] %vm58_vm0, %v404_v49 }
 0x22a   :  { %v393_v51 = vpop.permute.xlu0 %392 }
 0x22b   :  { %v403_v54 = vmul.f32 %v393_v51, %v354_v52 }
 0x22d   :  { %407 = vst.msk [vmem:[#allocation8 + $0x8] sm:$0xff] %vm58_vm0, %v403_v54 }
 0x22e   :  { %v397_v58 = vpop.permute.xlu1 %396 }
 0x22f   :  { %v405_v60 = vmul.f32 %v397_v58, %v384_v59 }
 0x231   :  { %409 = vst.msk [vmem:[#allocation8 + $0x18] sm:$0xff] %vm58_vm0, %v405_v60 }
 0x232 LB: > { %s1116_s30 = sshll.u32 %s902_s5, 3  ;;  %s415_s5 = sadd.s32 1, %s902_s5   ;;  %s902_s5 = sphi %s1110_s5, %s415_s5  }
 0x233   : > { %s418_s0 = sld [smem:[#allocation11 + %s1116_s30]]  ;;  %s426_s21 = sadd.s32 1, %s1116_s30 }
 0x234   : > { %s1121_s22 = scalar_lea.vmem [#allocation8], %s1116_s30  ;;  %s428_s23 = sld [smem:[#allocation11 + %s426_s21]] }
 0x235   : > { %s436_s1 = sadd.s32 2, %s1116_s30  ;;  %s446_s26 = sadd.s32 3, %s1116_s30 }
 0x236   : > { %s438_s3 = sld [smem:[#allocation11 + %s436_s1]]  ;;  %s456_s11 = sadd.s32 4, %s1116_s30 }
 0x237   : > { %s448_s28 = sld [smem:[#allocation11 + %s446_s26]]  ;;  %s465_s15 = sadd.s32 5, %s1116_s30 }
 0x238   : > { %v422_v61 = vld [vmem:[%s1121_s22] sm:$0x1]  ;;  %v759_v0 = vld [vmem:[%s1121_s22 + $0x1] sm:$0x1]  ;;  %v763_v3 = vld [vmem:[%s1121_s22 + $0x2] sm:$0x1] }
 0x239   : > { %s419_s25 = scalar_lea.vmem [#allocation5], %s418_s0  ;;  %v767_v6 = vld [vmem:[%s1121_s22 + $0x3] sm:$0x1]  ;;  %s458_s13 = sld [smem:[#allocation11 + %s456_s11]]  ;;  %v770_v9 = vld [vmem:[%s1121_s22 + $0x4] sm:$0x1] }
 0x23a   : > { %v420_v62 = vld [vmem:[%s419_s25] sm:$0x1]  ;;  %s672_s12 = scalar_lea.vmem [#allocation5], %s428_s23  ;;  %s467_s16 = sld [smem:[#allocation11 + %s465_s15]]  ;;  %v773_v12 = vld [vmem:[%s1121_s22 + $0x5] sm:$0x1] }
 0x23b   : > { %v423_v63 = vadd.f32 %v422_v61, %v420_v62  ;;  %s475_s18 = sadd.s32 6, %s1116_s30  ;;  %s485_s4 = sadd.s32 7, %s1116_s30  ;;  %v777_v15 = vld [vmem:[%s1121_s22 + $0x6] sm:$0x1]  ;;  %v781_v18 = vld [vmem:[%s1121_s22 + $0x7] sm:$0x1] }
 0x23c   : > { %s677_s29 = scalar_lea.vmem [#allocation5], %s438_s3  ;;  %s477_s27 = sld [smem:[#allocation11 + %s475_s18]] }
 0x23d   : > { %425 = vst.msk [vmem:[%s419_s25] sm:$0x1] %vm151_vm2, %v423_v63  ;;  %s682_s14 = scalar_lea.vmem [#allocation5], %s448_s28  ;;  %s487_s20 = sld [smem:[#allocation11 + %s485_s4]] }
 0x23e   : > { %p412_p1 = scmp.ge.s32.totalorder %s415_s5, 4  }
 0x23f   : > { %s459_s24 = scalar_lea.vmem [#allocation5], %s458_s13  ;;  %v909_v28 = vmov (%p412_p1), 16.0   ;;  %v515_v34 = vld [vmem:[#allocation4] sm:$0xff] (%p412_p1)  ;;  %v516_v36 = vld [vmem:[#allocation4 + $0x8] sm:$0xff] (%p412_p1)  ;;  %v829_v37 = vld [vmem:[%s1178_s7] ss:$0 sm:$0xff] (%p412_p1) }
 0x240   : > { %s691_s17 = scalar_lea.vmem [#allocation5], %s467_s16  ;;  %832 = vrcp.f32 (%p412_p1), %v909_v28  ;;  %s912_s11 = smov (%p412_p1), 8  }
 0x242   : > { %s696_s6 = scalar_lea.vmem [#allocation5], %s477_s27 }
 0x243   : > { %s701_s19 = scalar_lea.vmem [#allocation5], %s487_s20 }
 0x244   : > { %v757_v1 = vld [vmem:[%s672_s12 + $0x18] sm:$0x1] }
 0x245   : > { %v434_v2 = vadd.f32 %v759_v0, %v757_v1 }
 0x246   :  { %v833_v39 = vpop.eup (%p412_p1), %832 }
 0x247   : > { %760 = vst.msk [vmem:[%s672_s12 + $0x18] sm:$0x1] %vm151_vm2, %v434_v2  ;;  %v535_v42 = vmul.f32 (%p412_p1), 16.0, %v833_v39 }
 0x249   :  { %v536_v47 = vsub.f32 (%p412_p1), 1.0, %v535_v42 }
 0x24b   :  { %v537_v50 = vmul.f32 (%p412_p1), %v833_v39, %v536_v47 }
 0x24d   :  { %v538_v53 = vadd.f32 (%p412_p1), %v833_v39, %v537_v50 }
 0x24e   : > { %v761_v4 = vld [vmem:[%s677_s29 + $0x30] sm:$0x1] }
 0x24f   : > { %v444_v5 = vadd.f32 %v763_v3, %v761_v4 }
 0x251   : > { %764 = vst.msk [vmem:[%s677_s29 + $0x30] sm:$0x1] %vm151_vm2, %v444_v5  ;;  %s595_s29 = sshll.u32 (%p412_p1), %s1181_s10, 4  ;;  %s596_s29 = int_to_ptr.hbm [resolvable:$true] %s595_s29 }
 0x258   : > { %v765_v7 = vld [vmem:[%s682_s14 + $0x48] sm:$0x1] }
 0x259   : > { %v454_v8 = vadd.f32 %v767_v6, %v765_v7 }
 0x25b   : > { %768 = vst.msk [vmem:[%s682_s14 + $0x48] sm:$0x1] %vm151_vm2, %v454_v8 }
 0x262   : > { %v460_v10 = vld [vmem:[%s459_s24] sm:$0x1] }
 0x263   : > { %v463_v11 = vadd.f32 %v770_v9, %v460_v10 }
 0x265   : > { %464 = vst.msk [vmem:[%s459_s24] sm:$0x1] %vm151_vm2, %v463_v11 }
 0x26c   : > { %v771_v13 = vld [vmem:[%s691_s17 + $0x18] sm:$0x1] }
 0x26d   : > { %v473_v14 = vadd.f32 %v773_v12, %v771_v13 }
 0x26f   : > { %774 = vst.msk [vmem:[%s691_s17 + $0x18] sm:$0x1] %vm151_vm2, %v473_v14 }
 0x276   : > { %v775_v16 = vld [vmem:[%s696_s6 + $0x30] sm:$0x1] }
 0x277   : > { %v483_v17 = vadd.f32 %v777_v15, %v775_v16  ;;  %v830_v16 = vld [vmem:[%s1179_s8] ss:$0 sm:$0xff] (%p412_p1)  ;;  %s910_s8 = smov (%p412_p1), [#allocation12]  }
 0x278   :  { %s593_s12 = sshll.u32 (%p412_p1), %s910_s8, 4  ;;  %s594_s12 = int_to_ptr.vmem [resolvable:$true] %s593_s12 }
 0x279   : > { %778 = vst.msk [vmem:[%s696_s6 + $0x30] sm:$0x1] %vm151_vm2, %v483_v17 }
 0x27f   :  { %414 = sbr.rel (!%p412_p1) target bundleno = 562 (0x232), region = 136 }
 0x280   : > { %v779_v19 = vld [vmem:[%s701_s19 + $0x48] sm:$0x1] }
 0x281   : > { %v493_v20 = vadd.f32 %v781_v18, %v779_v19  ;;  %v831_v19 = vld [vmem:[%s1180_s9] ss:$0 sm:$0xff] (%p412_p1)  ;;  %s911_s9 = smov (%p412_p1), 128  }
 0x283   : > { %782 = vst.msk [vmem:[%s701_s19 + $0x48] sm:$0x1] %vm151_vm2, %v493_v20  ;;  %vm539_vm2 = vweird.f32 (%p412_p1), %v833_v39 }
 0x284   :  { %v540_v56 = vsel %vm539_vm2, %v833_v39, %v538_v53 }
 0x28a   :  { %v498_v21 = vld [vmem:[#allocation5] sm:$0xff]  ;;  %v499_v22 = vld [vmem:[#allocation5 + $0x8] sm:$0xff]  ;;  %v501_v23 = vld [vmem:[#allocation5 + $0x18] sm:$0xff] }
 0x28b   :  { %v502_v24 = vld [vmem:[#allocation5 + $0x20] sm:$0xff]  ;;  %v503_v25 = vadd.f32 %v501_v23, %v498_v21  ;;  %v506_v26 = vld [vmem:[#allocation5 + $0x30] sm:$0xff]  ;;  %v507_v27 = vld [vmem:[#allocation5 + $0x38] sm:$0xff] }
 0x28c   :  { %v504_v29 = vadd.f32 %v502_v24, %v499_v22  ;;  %v511_v30 = vld [vmem:[#allocation5 + $0x48] sm:$0xff]  ;;  %v512_v32 = vld [vmem:[#allocation5 + $0x50] sm:$0xff] }
 0x28d   :  { %v508_v31 = vadd.f32 %v506_v26, %v503_v25  ;;  %v581_v25 = vld [vmem:[%s1173_s2] sm:$0xff]  ;;  %v582_v26 = vld [vmem:[%s1173_s2 + $0x8] sm:$0xff] }
 0x28e   :  { %v509_v33 = vadd.f32 %v507_v27, %v504_v29 }
 0x28f   :  { %v513_v35 = vadd.f32 %v511_v30, %v508_v31 }
 0x290   :  { %v514_v38 = vadd.f32 %v512_v32, %v509_v33 }
 0x291   :  { %v517_v40 = vadd.f32 %v515_v34, %v513_v35 }
 0x292   :  { %v518_v41 = vadd.f32 %v516_v36, %v514_v38 }
 0x293   :  { %v523_v43 = vadd.f32 %v829_v37, %v517_v40 }
 0x294   :  { %v524_v44 = vadd.f32 %v829_v37, %v518_v41 }
 0x295   :  { %v525_v45 = vsel %vm58_vm0, %v523_v43, 0.0 }
 0x296   :  { %v526_v46 = vsel %vm58_vm0, %v524_v44, 0.0 }
 0x297   :  { %v527_v48 = vadd.f32 %v526_v46, %v525_v45 }
 0x299   :  { %v528_v49 = vrot.slane %v527_v48, 4 }
 0x29b   :  { %v529_v51 = vadd.f32 %v528_v49, %v527_v48 }
 0x29d   :  { %v530_v52 = vrot.slane %v529_v51, 2 }
 0x29f   :  { %v531_v54 = vadd.f32 %v530_v52, %v529_v51 }
 0x2a1   :  { %v532_v55 = vrot.slane %v531_v54, 1 }
 0x2a3   :  { %v533_v57 = vadd.f32 %v532_v55, %v531_v54 }
 0x2a5   :  { %v541_v58 = vmul.f32 %v540_v56, %v533_v57 }
 0x2a7   :  { %v542_v59 = vsub.f32 %v523_v43, %v541_v58  ;;  %v543_v60 = vsub.f32 %v524_v44, %v541_v58 }
 0x2a9   :  { %v544_v61 = vmul.f32 %v542_v59, %v542_v59  ;;  %v545_v62 = vmul.f32 %v543_v60, %v543_v60 }
 0x2ab   :  { %v546_v63 = vsel %vm58_vm0, %v544_v61, 0.0  ;;  %v547_v0 = vsel %vm58_vm0, %v545_v62, 0.0 }
 0x2ac   :  { %v548_v1 = vadd.f32 %v547_v0, %v546_v63 }
 0x2ae   :  { %v549_v2 = vrot.slane %v548_v1, 4 }
 0x2b0   :  { %v550_v3 = vadd.f32 %v549_v2, %v548_v1 }
 0x2b2   :  { %v551_v4 = vrot.slane %v550_v3, 2 }
 0x2b4   :  { %v552_v5 = vadd.f32 %v551_v4, %v550_v3 }
 0x2b6   :  { %v553_v6 = vrot.slane %v552_v5, 1 }
 0x2b8   :  { %v554_v7 = vadd.f32 %v553_v6, %v552_v5 }
 0x2ba   :  { %v555_v8 = vmul.f32 %v554_v7, %v540_v56 }
 0x2bc   :  { %v556_v9 = vadd.f32 1e-05, %v555_v8 }
 0x2be   :  { %834 = vrsqrt.f32 %v556_v9  ;;  %vm563_vm6 = vweird.f32 %v556_v9 }
 0x2c4   :  { %v835_v10 = vpop.eup %834 }
 0x2c5   :  { %v558_v11 = vmul.f32 %v835_v10, %v556_v9  ;;  %vm564_vm7 = vweird.f32 %v835_v10 }
 0x2c6   :  { %vm565_vm8 = vmor %vm563_vm6, %vm564_vm7 }
 0x2c7   :  { %v559_v12 = vmul.f32 %v835_v10, %v558_v11 }
 0x2c9   :  { %v560_v13 = vmul.f32 0.5, %v559_v12 }
 0x2cb   :  { %v561_v14 = vsub.f32 1.5, %v560_v13 }
 0x2cd   :  { %v562_v15 = vmul.f32 %v835_v10, %v561_v14 }
 0x2cf   :  { %v566_v17 = vsel %vm565_vm8, %v835_v10, %v562_v15 }
 0x2d0   :  { %v567_v18 = vmul.f32 %v566_v17, %v542_v59  ;;  %v568_v20 = vmul.f32 %v566_v17, %v543_v60 }
 0x2d2   :  { %v573_v21 = vmul.f32 %v830_v16, %v567_v18  ;;  %v574_v22 = vmul.f32 %v830_v16, %v568_v20 }
 0x2d4   :  { %v579_v23 = vadd.f32 %v831_v19, %v573_v21  ;;  %v580_v24 = vadd.f32 %v831_v19, %v574_v22 }
 0x2d6   :  { %v583_v27 = vmax.f32 %v579_v23, 0.0  ;;  %v584_v28 = vmax.f32 %v580_v24, 0.0 }
 0x2d8   :  { %v585_v29 = vadd.f32 %v583_v27, %v581_v25  ;;  %v586_v30 = vadd.f32 %v584_v28, %v582_v26 }
 0x2da   :  { %587 = vst.msk [vmem:[#allocation12] sm:$0xff] %vm58_vm0, %v585_v29 }
 0x2db   :  { %588 = vst.msk [vmem:[#allocation12 + $0x8] sm:$0xff] %vm58_vm0, %v586_v30 }
 0x2dc   :  { %601 = dma.vmem_to_hbm [thread:$0]  %s594_s12, 256, %s596_s29, [#allocation13], %s911_s9, %s911_s9, %s912_s11  }
 0x2dd   :  { %894 = dma.done.wait [#allocation13], 256  }
 0x2de   :  { %895 = vsyncadd [#allocation13], 4294967040 }
 0x2df   :  { %606 = vsyncpa [#allocation13], 1 }

</bundles_post_ra>
